<compile_context>
chip_gen: v5e
topology: v5e:2x2
jax: 0.10.0
libtpu: 0.0.40
codegen_flags: <defaults>
</compile_context>

<pallas_src>
import functools

import jax
import jax.numpy as jnp
import numpy as np
from jax import lax
from jax.experimental import pallas as pl
from jax.experimental.pallas import tpu as pltpu


# ----------------------------------------------------------------------------- helpers


def _round_up(x, m):
    return ((x + m - 1) // m) * m


def _pick_tile(n, target):
    """Largest divisor of n that is <= target, preferring sublane-friendly multiples."""
    target = max(1, min(target, n))
    if target == n:
        return n
    for pref in (16, 8):
        for t in range(target, pref - 1, -1):
            if t % pref == 0 and n % t == 0:
                return t
    return n  # fall back to the full dimension (always a legal block size)


def _vmem_limit_bytes(estimate):
    # Explicit scoped-VMEM request with headroom; capped so it also fits v7x (64 MiB phys).
    return int(min(max(2 * estimate, 32 * 1024 * 1024), 48 * 1024 * 1024))


def _pad_heads(w, num_heads, head_dim, head_dim_p):
    """(din, H*D) -> (din, H*Dp): zero-pad each head's channel block up to Dp lanes."""
    din = w.shape[0]
    w = w.reshape(din, num_heads, head_dim)
    w = jnp.pad(w, ((0, 0), (0, 0), (0, head_dim_p - head_dim)))
    return w.reshape(din, num_heads * head_dim_p)


def _prepare_params(params, num_heads, dim_in, compute_dtype):
    """Fuse QKV weights, fold softmax scale into Wq, pad heads/channels to 128 lanes."""
    wq, wk, wv, wp, bp = (params['wq'], params['wk'], params['wv'],
                          params['wp'], params['bp'])
    c = wq.shape[1]
    d = c // num_heads
    scale = d ** (-0.5)

    dp = _round_up(d, 128)            # padded head dim (lane-group aligned slices)
    cp = num_heads * dp               # padded attention width
    din_p = _round_up(dim_in, 128)    # padded projection-input width
    cop = _round_up(c, 128)           # padded (lane-dense) output width

    wq_p = _pad_heads(wq.astype(jnp.float32) * scale, num_heads, d, dp)
    wk_p = _pad_heads(wk, num_heads, d, dp)
    wv_p = _pad_heads(wv, num_heads, d, dp)
    wqkv = jnp.concatenate([wq_p, wk_p, wv_p], axis=1)          # (dim_in, 3*Cp)
    wqkv = jnp.pad(wqkv, ((0, din_p - dim_in), (0, 0)))         # (Din_p, 3*Cp)

    # proj: rows follow the per-head padded layout of the attention output,
    # columns are plain zero-padded to a lane-dense width.
    wp_p = wp.reshape(num_heads, d, c)
    wp_p = jnp.pad(wp_p, ((0, 0), (0, dp - d), (0, cop - c))).reshape(cp, cop)
    bp_p = jnp.pad(jnp.asarray(bp).reshape(1, c), ((0, 0), (0, cop - c)))

    return (wqkv.astype(compute_dtype), wp_p.astype(compute_dtype),
            bp_p.astype(jnp.float32), din_p, cp, cop, dp)


# ----------------------------------------------------------------------------- kernels


def _qkv_proj_kernel(x_ref, wqkv_ref, q_ref, k_ref, v_ref):
    # x_ref: (1, TN, Din_p); wqkv_ref: (Din_p, 3*Cp); outputs: (1, TN, Cp) each.
    y = jnp.dot(x_ref[0], wqkv_ref[...], preferred_element_type=jnp.float32)
    cp = q_ref.shape[-1]
    q_ref[0] = y[:, 0 * cp:1 * cp].astype(q_ref.dtype)   # scale already folded into Wq
    k_ref[0] = y[:, 1 * cp:2 * cp].astype(k_ref.dtype)
    v_ref[0] = y[:, 2 * cp:3 * cp].astype(v_ref.dtype)


def _flash_attn_proj_kernel(q_ref, k_ref, v_ref, wp_ref, bp_ref, o_ref,
                            m_sc, l_sc, acc_sc, *, num_heads, head_dim_p):
    kv = pl.program_id(2)

    @pl.when(kv == 0)
    def _init():
        m_sc[...] = jnp.full(m_sc.shape, -jnp.inf, dtype=jnp.float32)
        l_sc[...] = jnp.zeros(l_sc.shape, dtype=jnp.float32)
        acc_sc[...] = jnp.zeros(acc_sc.shape, dtype=jnp.float32)

    q = q_ref[0]   # (TQ, Cp), pre-scaled
    k = k_ref[0]   # (TK, Cp)
    v = v_ref[0]   # (TK, Cp)

    # Per-head lane slices (head_dim_p is a multiple of 128 -> lane-group aligned).
    for h in range(num_heads):
        lo, hi = h * head_dim_p, (h + 1) * head_dim_p
        s = lax.dot_general(q[:, lo:hi], k[:, lo:hi],
                            (((1,), (1,)), ((), ())),
                            preferred_element_type=jnp.float32)          # (TQ, TK)
        m_prev = m_sc[h]                                                 # (TQ, 1)
        m_new = jnp.maximum(m_prev, jnp.max(s, axis=-1, keepdims=True))
        alpha = jnp.exp(m_prev - m_new)
        p = jnp.exp(s - m_new)
        l_sc[h] = alpha * l_sc[h] + jnp.sum(p, axis=-1, keepdims=True)
        acc_sc[:, lo:hi] = alpha * acc_sc[:, lo:hi] + jnp.dot(
            p.astype(v.dtype), v[:, lo:hi], preferred_element_type=jnp.float32)
        m_sc[h] = m_new

    @pl.when(kv == pl.num_programs(2) - 1)
    def _finalize():
        outs = []
        for h in range(num_heads):
            lo, hi = h * head_dim_p, (h + 1) * head_dim_p
            inv_l = pl.reciprocal(l_sc[h], approx=True)                  # EUP slot
            outs.append(acc_sc[:, lo:hi] * inv_l)
        o = jnp.concatenate(outs, axis=-1)                               # (TQ, Cp) f32
        proj = jnp.dot(o.astype(wp_ref.dtype), wp_ref[...],
                       preferred_element_type=jnp.float32) + bp_ref[...]
        o_ref[0] = proj.astype(o_ref.dtype)


# ----------------------------------------------------------------------------- wrapper


def memvit_attention(x, params, thw_shape, num_heads, *, compute_dtype=None,
                     block_q=256, block_kv=256, block_proj=512):
    """Pallas forward of MeMViTAttention (default config, first call / empty memory).

    x: (B, N, dim_in) with N == prod(thw_shape).
    compute_dtype: dtype of the matmul inputs (e.g. jnp.bfloat16 for MXU-rate math with
    f32 accumulation); defaults to x.dtype.  Returns (out (B, N, dim_out), q_shape list).
    """
    B, N, dim_in = x.shape
    assert N == int(np.prod(thw_shape))
    C = params['wq'].shape[1]
    assert C % num_heads == 0
    out_dtype = x.dtype
    if compute_dtype is None:
        compute_dtype = x.dtype

    wqkv, wp_p, bp_p, din_p, cp, cop, dp = _prepare_params(
        params, num_heads, dim_in, compute_dtype)

    x_p = x
    if din_p != dim_in:
        x_p = jnp.pad(x, ((0, 0), (0, 0), (0, din_p - dim_in)))
    x_p = x_p.astype(compute_dtype)

    tn = _pick_tile(N, block_proj)
    tq = _pick_tile(N, block_q)
    tk = _pick_tile(N, block_kv)

    csize = jnp.dtype(compute_dtype).itemsize
    osize = jnp.dtype(out_dtype).itemsize
    qkv_vmem = 2 * (tn * din_p + 3 * tn * cp) * csize + 2 * (din_p * 3 * cp) * csize
    attn_vmem = (2 * (tq + 2 * tk) * cp * csize + 2 * tq * cop * osize
                 + 2 * (cp * cop + cop) * csize
                 + (2 * num_heads * tq * 128 + tq * cp) * 4)

    def _build(single_buffered):
        def wspec(shape):
            index_map = lambda *_, _n=len(shape): (0,) * _n
            if single_buffered:
                # constant blocks -> no need for double buffering; frees VMEM for tiles.
                return pl.BlockSpec(shape, index_map,
                                    pipeline_mode=pl.Buffered(buffer_count=1))
            return pl.BlockSpec(shape, index_map)

        qkv_call = pl.pallas_call(
            _qkv_proj_kernel,
            out_shape=[jax.ShapeDtypeStruct((B, N, cp), compute_dtype)] * 3,
            grid_spec=pltpu.PrefetchScalarGridSpec(
                num_scalar_prefetch=0,
                grid=(B, N // tn),
                in_specs=[
                    pl.BlockSpec((1, tn, din_p), lambda b, t: (b, t, 0)),
                    wspec((din_p, 3 * cp)),
                ],
                out_specs=[pl.BlockSpec((1, tn, cp), lambda b, t: (b, t, 0))] * 3,
            ),
            compiler_params=pltpu.CompilerParams(
                dimension_semantics=("parallel", "parallel"),
                vmem_limit_bytes=_vmem_limit_bytes(qkv_vmem)),
        )

        attn_kernel = functools.partial(_flash_attn_proj_kernel,
                                        num_heads=num_heads, head_dim_p=dp)
        attn_call = pl.pallas_call(
            attn_kernel,
            out_shape=jax.ShapeDtypeStruct((B, N, cop), out_dtype),
            grid_spec=pltpu.PrefetchScalarGridSpec(
                num_scalar_prefetch=0,
                grid=(B, N // tq, N // tk),
                in_specs=[
                    pl.BlockSpec((1, tq, cp), lambda b, i, j: (b, i, 0)),   # q (resident)
                    pl.BlockSpec((1, tk, cp), lambda b, i, j: (b, j, 0)),   # k (streamed)
                    pl.BlockSpec((1, tk, cp), lambda b, i, j: (b, j, 0)),   # v (streamed)
                    wspec((cp, cop)),                                       # Wp
                    wspec((1, cop)),                                        # bias
                ],
                out_specs=pl.BlockSpec((1, tq, cop), lambda b, i, j: (b, i, 0)),
                scratch_shapes=[
                    pltpu.VMEM((num_heads, tq, 1), jnp.float32),   # running max
                    pltpu.VMEM((num_heads, tq, 1), jnp.float32),   # running sum
                    pltpu.VMEM((tq, cp), jnp.float32),             # output accumulator
                ],
            ),
            compiler_params=pltpu.CompilerParams(
                dimension_semantics=("parallel", "parallel", "arbitrary"),
                vmem_limit_bytes=_vmem_limit_bytes(attn_vmem)),
        )
        return qkv_call, attn_call

    out_p = None
    for single_buffered in (True, False):
        try:
            qkv_call, attn_call = _build(single_buffered)
            q, k, v = qkv_call(x_p, wqkv)
            out_p = attn_call(q, k, v, wp_p, bp_p)
            out_p = jax.block_until_ready(out_p)
            break
        except Exception:
            # pl.Buffered(1) pipeline_mode unsupported on this jax build -> plain specs.
            if not single_buffered:
                raise

    out = out_p[..., :C] if cop != C else out_p
    # pool_q is None => q_shape == thw_shape
    return out, list(thw_shape)


# ----------------------------------------------------------------------------- reference


def _reference(x, params, num_heads):
    """Pure-JAX reference mirroring the PyTorch forward (defaults, empty memory)."""
    B, N, dim_in = x.shape
    C = params['wq'].shape[1]
    head_dim = C // num_heads
    scale = head_dim ** (-0.5)
    xf = x.astype(jnp.float32)
    q = xf @ params['wq']
    k = xf @ params['wk']
    v = xf @ params['wv']
    q = q.reshape(B, N, num_heads, head_dim).transpose(0, 2, 1, 3)
    k = k.reshape(B, N, num_heads, head_dim).transpose(0, 2, 1, 3)
    v = v.reshape(B, N, num_heads, head_dim).transpose(0, 2, 1, 3)
    attn = (q * scale) @ k.transpose(0, 1, 3, 2)
    attn = jax.nn.softmax(attn, axis=-1)
    o = attn @ v
    o = o.transpose(0, 2, 1, 3).reshape(B, N, C)
    return o @ params['wp'] + params['bp'][0]


# ----------------------------------------------------------------------------- demo


if __name__ == "__main__":
    # Small shapes consistent with the module: dim=32, num_heads=4, thw=(2,4,4).
    B = 2
    thw_shape = (2, 4, 4)
    N = int(np.prod(thw_shape))          # 32 tokens
    dim = 32                             # dim_in == dim_out (expand_channel=False)
    num_heads = 4

    key = jax.random.PRNGKey(0)
    kx, kq, kk, kv_, kp, kb = jax.random.split(key, 6)

    x = jax.random.normal(kx, (B, N, dim), dtype=jnp.float32)

    # nn.Linear weights stored as (out, in) in torch; pre-transposed here to (in, out).
    params = {
        'wq': 0.1 * jax.random.normal(kq, (dim, dim), dtype=jnp.float32),
        'wk': 0.1 * jax.random.normal(kk, (dim, dim), dtype=jnp.float32),
        'wv': 0.1 * jax.random.normal(kv_, (dim, dim), dtype=jnp.float32),
        'wp': 0.1 * jax.random.normal(kp, (dim, dim), dtype=jnp.float32),
        'bp': 0.1 * jax.random.normal(kb, (1, dim), dtype=jnp.float32),
    }

    ref = _reference(x, params, num_heads)

    # f32 matmul-input path (tight check; approx reciprocal only).
    out, q_shape = memvit_attention(x, params, thw_shape, num_heads,
                                    compute_dtype=jnp.float32)
    out = jax.block_until_ready(out)
    assert out.shape == (B, N, dim)
    assert q_shape == list(thw_shape)
    np.testing.assert_allclose(np.asarray(out), np.asarray(ref), rtol=5e-3, atol=5e-3)

    # bf16 matmul-input path with f32 accumulation (MXU-rate on v6e/v7x; looser check).
    out_bf16, _ = memvit_attention(x, params, thw_shape, num_heads,
                                   compute_dtype=jnp.bfloat16)
    out_bf16 = jax.block_until_ready(out_bf16)
    np.testing.assert_allclose(np.asarray(out_bf16), np.asarray(ref), rtol=3e-2, atol=3e-2)

    print("KERNEL_OK")
</pallas_src>

<mosaic_0001>
module attributes {stable_mosaic.version = 11 : i64} {
  func.func @_qkv_proj_kernel(%arg0: i32, %arg1: i32, %arg2: memref<1x32x128xf32, #tpu.memory_space<vmem>>, %arg3: memref<128x1536xf32, #tpu.memory_space<vmem>>, %arg4: memref<1x32x512xf32, #tpu.memory_space<vmem>>, %arg5: memref<1x32x512xf32, #tpu.memory_space<vmem>>, %arg6: memref<1x32x512xf32, #tpu.memory_space<vmem>>) attributes {dimension_semantics = [#tpu.dimension_semantics<parallel>, #tpu.dimension_semantics<parallel>], iteration_bounds = array<i64: 2, 1>, scalar_prefetch = 0 : i64, scratch_operands = 0 : i64, tpu.core_type = #tpu.core_type<tc>, window_params = [{transform_indices = @transform_0, window_bounds = array<i64: 1, 32, 128>}, {pipeline_mode = #tpu.pipeline_mode<synchronous>, transform_indices = @transform_1, window_bounds = array<i64: 128, 1536>}, {transform_indices = @transform_2, window_bounds = array<i64: 1, 32, 512>}, {transform_indices = @transform_3, window_bounds = array<i64: 1, 32, 512>}, {transform_indices = @transform_4, window_bounds = array<i64: 1, 32, 512>}]} {
    %c0 = arith.constant 0 : index
    %c0_0 = arith.constant 0 : index
    %c0_1 = arith.constant 0 : index
    %0 = vector.load %arg2[%c0, %c0_0, %c0_1] : memref<1x32x128xf32, #tpu.memory_space<vmem>>, vector<1x32x128xf32>
    %1 = vector.shape_cast %0 : vector<1x32x128xf32> to vector<32x128xf32>
    %c0_2 = arith.constant 0 : index
    %c0_3 = arith.constant 0 : index
    %2 = vector.load %arg3[%c0_2, %c0_3] : memref<128x1536xf32, #tpu.memory_space<vmem>>, vector<128x1536xf32>
    %cst = arith.constant dense<0.000000e+00> : vector<32x1536xf32>
    %3 = tpu.matmul %1, %2, %cst {dimension_numbers = #tpu.dot_dimension_numbers<[1], [0], [0], [1], [0, 0, 1, 1], [], []>} : vector<32x128xf32>, vector<128x1536xf32>, vector<32x1536xf32> -> vector<32x1536xf32>
    %4 = vector.extract_strided_slice %3 {offsets = [0, 0], sizes = [32, 512], strides = [1, 1]} : vector<32x1536xf32> to vector<32x512xf32>
    %c0_4 = arith.constant 0 : index
    %c0_5 = arith.constant 0 : index
    %c0_6 = arith.constant 0 : index
    %5 = vector.load %arg4[%c0_4, %c0_5, %c0_6] : memref<1x32x512xf32, #tpu.memory_space<vmem>>, vector<1x32x512xf32>
    %6 = vector.shape_cast %5 : vector<1x32x512xf32> to vector<32x512xf32>
    %7 = vector.shape_cast %4 : vector<32x512xf32> to vector<1x32x512xf32>
    tpu.vector_store %arg4[%c0_4, %c0_5, %c0_6], %7 {strides = array<i32>} : memref<1x32x512xf32, #tpu.memory_space<vmem>>, vector<1x32x512xf32>,
    %8 = vector.extract_strided_slice %3 {offsets = [0, 512], sizes = [32, 512], strides = [1, 1]} : vector<32x1536xf32> to vector<32x512xf32>
    %c0_7 = arith.constant 0 : index
    %c0_8 = arith.constant 0 : index
    %c0_9 = arith.constant 0 : index
    %9 = vector.load %arg5[%c0_7, %c0_8, %c0_9] : memref<1x32x512xf32, #tpu.memory_space<vmem>>, vector<1x32x512xf32>
    %10 = vector.shape_cast %9 : vector<1x32x512xf32> to vector<32x512xf32>
    %11 = vector.shape_cast %8 : vector<32x512xf32> to vector<1x32x512xf32>
    tpu.vector_store %arg5[%c0_7, %c0_8, %c0_9], %11 {strides = array<i32>} : memref<1x32x512xf32, #tpu.memory_space<vmem>>, vector<1x32x512xf32>,
    %12 = vector.extract_strided_slice %3 {offsets = [0, 1024], sizes = [32, 512], strides = [1, 1]} : vector<32x1536xf32> to vector<32x512xf32>
    %c0_10 = arith.constant 0 : index
    %c0_11 = arith.constant 0 : index
    %c0_12 = arith.constant 0 : index
    %13 = vector.load %arg6[%c0_10, %c0_11, %c0_12] : memref<1x32x512xf32, #tpu.memory_space<vmem>>, vector<1x32x512xf32>
    %14 = vector.shape_cast %13 : vector<1x32x512xf32> to vector<32x512xf32>
    %15 = vector.shape_cast %12 : vector<32x512xf32> to vector<1x32x512xf32>
    tpu.vector_store %arg6[%c0_10, %c0_11, %c0_12], %15 {strides = array<i32>} : memref<1x32x512xf32, #tpu.memory_space<vmem>>, vector<1x32x512xf32>,
    return
  }
  func.func @transform_0(%arg0: i32, %arg1: i32) -> (i32, i32, i32) {
    %c0_i32 = arith.constant 0 : i32
    %c0_i32_0 = arith.constant 0 : i32
    return %arg0, %arg1, %c0_i32 : i32, i32, i32
  }
  func.func @transform_1(%arg0: i32, %arg1: i32) -> (i32, i32) {
    %c0_i32 = arith.constant 0 : i32
    %c0_i32_0 = arith.constant 0 : i32
    %c0_i32_1 = arith.constant 0 : i32
    return %c0_i32, %c0_i32_0 : i32, i32
  }
  func.func @transform_2(%arg0: i32, %arg1: i32) -> (i32, i32, i32) {
    %c0_i32 = arith.constant 0 : i32
    %c0_i32_0 = arith.constant 0 : i32
    return %arg0, %arg1, %c0_i32 : i32, i32, i32
  }
  func.func @transform_3(%arg0: i32, %arg1: i32) -> (i32, i32, i32) {
    %c0_i32 = arith.constant 0 : i32
    %c0_i32_0 = arith.constant 0 : i32
    return %arg0, %arg1, %c0_i32 : i32, i32, i32
  }
  func.func @transform_4(%arg0: i32, %arg1: i32) -> (i32, i32, i32) {
    %c0_i32 = arith.constant 0 : i32
    %c0_i32_0 = arith.constant 0 : i32
    return %arg0, %arg1, %c0_i32 : i32, i32, i32
  }
}

module attributes {stable_mosaic.version = 11 : i64} {
  func.func @_qkv_proj_kernel(%arg0: i32, %arg1: i32, %arg2: memref<1x32x128xf32, #tpu.memory_space<vmem>>, %arg3: memref<128x1536xf32, #tpu.memory_space<vmem>>, %arg4: memref<1x32x512xf32, #tpu.memory_space<vmem>>, %arg5: memref<1x32x512xf32, #tpu.memory_space<vmem>>, %arg6: memref<1x32x512xf32, #tpu.memory_space<vmem>>) attributes {dimension_semantics = [#tpu.dimension_semantics<parallel>, #tpu.dimension_semantics<parallel>], iteration_bounds = array<i64: 2, 1>, scalar_prefetch = 0 : i64, scratch_operands = 0 : i64, tpu.core_type = #tpu.core_type<tc>, window_params = [{transform_indices = @transform_0, window_bounds = array<i64: 1, 32, 128>}, {pipeline_mode = #tpu.pipeline_mode<synchronous>, transform_indices = @transform_1, window_bounds = array<i64: 128, 1536>}, {transform_indices = @transform_2, window_bounds = array<i64: 1, 32, 512>}, {transform_indices = @transform_3, window_bounds = array<i64: 1, 32, 512>}, {transform_indices = @transform_4, window_bounds = array<i64: 1, 32, 512>}]} {
    %c0 = arith.constant 0 : index
    %c0_0 = arith.constant 0 : index
    %c0_1 = arith.constant 0 : index
    %0 = vector.load %arg2[%c0, %c0_0, %c0_1] : memref<1x32x128xf32, #tpu.memory_space<vmem>>, vector<1x32x128xf32>
    %1 = vector.shape_cast %0 : vector<1x32x128xf32> to vector<32x128xf32>
    %c0_2 = arith.constant 0 : index
    %c0_3 = arith.constant 0 : index
    %2 = vector.load %arg3[%c0_2, %c0_3] : memref<128x1536xf32, #tpu.memory_space<vmem>>, vector<128x1536xf32>
    %cst = arith.constant dense<0.000000e+00> : vector<32x1536xf32>
    %3 = tpu.matmul %1, %2, %cst {dimension_numbers = #tpu.dot_dimension_numbers<[1], [0], [0], [1], [0, 0, 1, 1], [], []>} : vector<32x128xf32>, vector<128x1536xf32>, vector<32x1536xf32> -> vector<32x1536xf32>
    %4 = vector.extract_strided_slice %3 {offsets = [0, 0], sizes = [32, 512], strides = [1, 1]} : vector<32x1536xf32> to vector<32x512xf32>
    %c0_4 = arith.constant 0 : index
    %c0_5 = arith.constant 0 : index
    %c0_6 = arith.constant 0 : index
    %5 = vector.load %arg4[%c0_4, %c0_5, %c0_6] : memref<1x32x512xf32, #tpu.memory_space<vmem>>, vector<1x32x512xf32>
    %6 = vector.shape_cast %5 : vector<1x32x512xf32> to vector<32x512xf32>
    %7 = vector.shape_cast %4 : vector<32x512xf32> to vector<1x32x512xf32>
    tpu.vector_store %arg4[%c0_4, %c0_5, %c0_6], %7 {strides = array<i32>} : memref<1x32x512xf32, #tpu.memory_space<vmem>>, vector<1x32x512xf32>,
    %8 = vector.extract_strided_slice %3 {offsets = [0, 512], sizes = [32, 512], strides = [1, 1]} : vector<32x1536xf32> to vector<32x512xf32>
    %c0_7 = arith.constant 0 : index
    %c0_8 = arith.constant 0 : index
    %c0_9 = arith.constant 0 : index
    %9 = vector.load %arg5[%c0_7, %c0_8, %c0_9] : memref<1x32x512xf32, #tpu.memory_space<vmem>>, vector<1x32x512xf32>
    %10 = vector.shape_cast %9 : vector<1x32x512xf32> to vector<32x512xf32>
    %11 = vector.shape_cast %8 : vector<32x512xf32> to vector<1x32x512xf32>
    tpu.vector_store %arg5[%c0_7, %c0_8, %c0_9], %11 {strides = array<i32>} : memref<1x32x512xf32, #tpu.memory_space<vmem>>, vector<1x32x512xf32>,
    %12 = vector.extract_strided_slice %3 {offsets = [0, 1024], sizes = [32, 512], strides = [1, 1]} : vector<32x1536xf32> to vector<32x512xf32>
    %c0_10 = arith.constant 0 : index
    %c0_11 = arith.constant 0 : index
    %c0_12 = arith.constant 0 : index
    %13 = vector.load %arg6[%c0_10, %c0_11, %c0_12] : memref<1x32x512xf32, #tpu.memory_space<vmem>>, vector<1x32x512xf32>
    %14 = vector.shape_cast %13 : vector<1x32x512xf32> to vector<32x512xf32>
    %15 = vector.shape_cast %12 : vector<32x512xf32> to vector<1x32x512xf32>
    tpu.vector_store %arg6[%c0_10, %c0_11, %c0_12], %15 {strides = array<i32>} : memref<1x32x512xf32, #tpu.memory_space<vmem>>, vector<1x32x512xf32>,
    return
  }
  func.func @transform_0(%arg0: i32, %arg1: i32) -> (i32, i32, i32) {
    %c0_i32 = arith.constant 0 : i32
    %c0_i32_0 = arith.constant 0 : i32
    return %arg0, %arg1, %c0_i32 : i32, i32, i32
  }
  func.func @transform_1(%arg0: i32, %arg1: i32) -> (i32, i32) {
    %c0_i32 = arith.constant 0 : i32
    %c0_i32_0 = arith.constant 0 : i32
    %c0_i32_1 = arith.constant 0 : i32
    return %c0_i32, %c0_i32_0 : i32, i32
  }
  func.func @transform_2(%arg0: i32, %arg1: i32) -> (i32, i32, i32) {
    %c0_i32 = arith.constant 0 : i32
    %c0_i32_0 = arith.constant 0 : i32
    return %arg0, %arg1, %c0_i32 : i32, i32, i32
  }
  func.func @transform_3(%arg0: i32, %arg1: i32) -> (i32, i32, i32) {
    %c0_i32 = arith.constant 0 : i32
    %c0_i32_0 = arith.constant 0 : i32
    return %arg0, %arg1, %c0_i32 : i32, i32, i32
  }
  func.func @transform_4(%arg0: i32, %arg1: i32) -> (i32, i32, i32) {
    %c0_i32 = arith.constant 0 : i32
    %c0_i32_0 = arith.constant 0 : i32
    return %arg0, %arg1, %c0_i32 : i32, i32, i32
  }
}

</mosaic_0001>

<bundles_post_ra>
// kernel: tpu_custom_call.1
= control target key start
LH: loop header
LB: loop body
LE: loop exit
PB: predicated region body
PF: predicated region fallthrough
CT: control target
= control target key end

     0   :  { %s1792_s0 = inlined_call_operand.hbm [shape: f32[2,32,128], index: 0, kind: input, shape index: {}]   ;;  %s1793_s1 = inlined_call_operand.hbm [shape: f32[128,1536], index: 1, kind: input, shape index: {}]   ;;  %s1794_s2 = inlined_call_operand.hbm [shape: f32[2,32,512], index: 2, kind: output, shape index: {0}]   ;;  %s1795_s3 = inlined_call_operand.hbm [shape: f32[2,32,512], index: 3, kind: output, shape index: {1}]   ;;  %s1796_s4 = inlined_call_operand.hbm [shape: f32[2,32,512], index: 4, kind: output, shape index: {2}]  }
   0x1   :  { %1799 = sst [smem:[#allocation16_spill]] %s1793_s1 }
   0x2   :  { %10 = vsyncpa [#allocation3], 0 }
   0x3   :  { %12 = vsyncpa [#allocation3 + $0x1], 0 }
   0x4   :  { %13 = vsyncpa [#allocation6], 0 }
   0x5   :  { %14 = vsyncpa [#allocation4], 0 }
   0x6   :  { %16 = vsyncpa [#allocation4 + $0x1], 0 }
   0x7   :  { %17 = vsyncpa [#allocation9], 0 }
   0x8   :  { %19 = vsyncpa [#allocation9 + $0x1], 0  ;;  %s1464_s15 = smov 0   ;;  %s1466_s16 = smov 0  }
   0x9   :  { %s1468_s17 = smov 0   ;;  %s1470_s18 = smov 0  }
   0xa   :  { %s1472_s19 = smov 0   ;;  %s1474_s20 = smov 0  }
   0xb LB: > { %s1495_s21 = sadd.s32 4294967295, %s1430_s20   ;;  %s1797_s22 = sadd.s32 4294967294, %s1430_s20   ;;  %s1430_s20 = sphi %s1474_s20, %s25_s20   ;;  %s1426_s19 = sphi %s1472_s19, %s1813_s19   ;;  %s1422_s18 = sphi %s1470_s18, %s1812_s18   ;;  %s1418_s17 = sphi %s1468_s17, %s1811_s17   ;;  %s1414_s16 = sphi %s1466_s16, %s1810_s16   ;;  %s1410_s15 = sphi %s1464_s15, %s1809_s15  }
   0xc   : > { %p59_p0 = scmp.ne.s32.totalorder %s1414_s16, %s1410_s15  ;;  %p60_p1 = scmp.eq.s32.totalorder %s1495_s21, 0 }
   0xd   : > { %p106_p2 = scmp.eq.s32.totalorder %s1495_s21, 1  ;;  %p112_p3 = scmp.eq.s32.totalorder %s1797_s22, 1 }
   0xe   : > { %p1506_p4 = por %p60_p1, %p59_p0  ;;  %p1108_p5 = scmp.ge.s32.totalorder %s1430_s20, 1 }
   0xf   : > { %p1511_p6 = por %p112_p3, %p59_p0  ;;  %p175_p7 = scmp.lt.s32.totalorder %s1430_s20, 3 }
  0x10   : > { %s1802_s1 = sld [smem:[#allocation16_spill]]  ;;  %s1432_s29 = smov [#allocation5]  }
  0x11   : > { %p1519_p8 = pnand %p1108_p5, %p175_p7  ;;  %s188_s30 = sshll.u32 %s1432_s29, 4  ;;  %s189_s30 = int_to_ptr.vmem [resolvable:$true] %s188_s30 }
  0x12   : > { %p1110_p11 = scmp.ge.s32.totalorder %s1430_s20, 2  ;;  %s1433_s5 = smov 1536  }
  0x13   : > { %p1147_p9 = pneg %p1519_p8  ;;  %s1434_s6 = smov 96  }
  0x14   : > { %s37_s7 = sadd.s32 1, %s1426_s19  ;;  %s46_s8 = sadd.s32 1, %s1418_s17 }
  0x15   : > { %p1148_p10 = pnand %p1147_p9, %p60_p1  ;;  %p39_p12 = scmp.ge.s32.totalorder %s37_s7, 2 }
  0x16   : > { %s186_s27 = sshll.u32 %s1802_s1, 4  ;;  %p53_p13 = scmp.ne.s32.totalorder %s1418_s17, %s1414_s16  ;;  %s187_s27 = int_to_ptr.hbm [resolvable:$true] %s186_s27 }
  0x17   : > { %1150 = dma.hbm_to_vmem [thread:$0]  (!%p1148_p10), %s187_s27, 24576, %s189_s30, [#allocation6], %s1433_s5, %s1433_s5, %s1434_s6  }
  0x18   : > { %p54_p0 = scmp.eq.s32.totalorder %s1430_s20, 0  ;;  %s1815_s7 = smov (%p39_p12, %s37_s7), 0 }
  0x19   : > { %1804 = sst [smem:[#allocation15_spill]] %s1815_s7  ;;  %p1541_p5 = por %p106_p2, %p53_p13 }
  0x1a   : > { %p1535_p3 = por %p54_p0, %p53_p13  ;;  %s41_s11 = ssub.s32 %s1426_s19, %s1815_s7 }
  0x1b   : > { %p1166_p7 = scmp.lt.s32.totalorder %s1430_s20, 2  ;;  %p44_p9 = scmp.eq.s32.totalorder %s41_s11, 0 }
  0x1c   : > { %s202_s12 = sand.u32 1, %s1418_s17   ;;  %s1131_s25 = sshll.u32 %s1426_s19, 5 }
  0x1d   : > { %s1111_s13 = sshll.u32 %s202_s12, 5  ;;  %s213_s29 = scalar_lea.hbm %s1792_s0, %s1131_s25 }
  0x1e   : > { %s1550_s14 = scalar_select %p44_p9, %s1418_s17, %s46_s8  }
  0x1f   : > { %s206_s30 = scalar_lea.vmem [#allocation2], %s1111_s13  ;;  %s214_s6 = sshll.u32 %s213_s29, 4  ;;  %s215_s6 = int_to_ptr.hbm [resolvable:$true] %s214_s6 }
  0x20   : > { %s216_s5 = sshll.u32 %s206_s30, 4  ;;  %p1152_p2 = pnand %p1166_p7, %p1535_p3  ;;  %s217_s5 = int_to_ptr.vmem [resolvable:$true] %s216_s5 }
  0x21   : > { %s203_s22 = scalar_lea.sflag [#allocation3], %s202_s12  ;;  %s1435_s1 = smov 128  }
  0x22   : > { %s1436_s7 = smov 8   ;;  %228 = sbr.rel (%p1519_p8) target bundleno = 313 (0x139), region = 28 }
  0x23   : > { %1154 = dma.hbm_to_vmem [thread:$0]  (!%p1152_p2), %s215_s6, 512, %s217_s5, %s203_s22, %s1435_s1, %s1435_s1, %s1436_s7  }
  0x24   : > { %s1561_s8 = sand.u32 (!%p1519_p8), 1, %s1414_s16  }
  0x25   : > { %s1115_s11 = sshll.u32 (!%p1519_p8), %s1561_s8, 5  ;;  %s231_s13 = scalar_lea.sflag (!%p1519_p8), [#allocation3], %s1561_s8 }
  0x26   : > { %s1565_s25 = scalar_lea.vmem (!%p1519_p8), [#allocation2], %s1115_s11 }
  0x27   : > { %1393 = dma.done.wait (%p1506_p4), %s231_s13, 512  }
  0x28   : > { %1395 = vsyncadd (%p1506_p4), %s231_s13, 4294966784 }
  0x29   : > { %1397 = dma.done.wait (%p60_p1), [#allocation6], 24576  }
  0x2a   : > { %1399 = vsyncadd (%p60_p1), [#allocation6], 4294942720  ;;  %v465_v0 = vld [vmem:[#allocation5 + $0x5b0] sm:$0xff]  ;;  %v466_v1 = vld [vmem:[#allocation5 + $0x5b8] sm:$0xff]  ;;  %s1636_s1 = sshll.u32 %s1561_s8, 7  ;;  %s1653_s23 = sshll.u32 %s1422_s18, 7 }
  0x2b   : > { %v453_v2 = vld [vmem:[#allocation5 + $0x550] sm:$0xff]  ;;  %533 = vmatpush.msra.mxu2 %v465_v0  ;;  %562 = vmatpush.msra.mxu3 %v466_v1  ;;  %v454_v3 = vld [vmem:[#allocation5 + $0x558] sm:$0xff]  ;;  %v463_v6 = vld [vmem:[#allocation5 + $0x5a0] sm:$0xff]  ;;  %s1639_s22 = scalar_lea.vmem [#allocation7], %s1636_s1  ;;  %s896_s9 = scalar_lea.hbm %s1794_s2, %s1653_s23 }
  0x2c   : > { %v441_v4 = vld [vmem:[#allocation5 + $0x4f0] sm:$0xff]  ;;  %v442_v5 = vld [vmem:[#allocation5 + $0x4f8] sm:$0xff]  ;;  %v464_v7 = vld [vmem:[#allocation5 + $0x5a8] sm:$0xff]  ;;  %475 = vmatpush.msra.mxu0 %v463_v6  ;;  %s897_s12 = sshll.u32 %s1639_s22, 4  ;;  %s1661_s26 = sshll.u32 %s896_s9, 4  ;;  %s898_s12 = int_to_ptr.vmem [resolvable:$true] %s897_s12  ;;  %s900_s26 = int_to_ptr.hbm [resolvable:$true] %s1661_s26 }
  0x2d   : > { %534 = vmatpush.msra.mxu2 %v453_v2  ;;  %563 = vmatpush.msra.mxu3 %v454_v3  ;;  %v451_v8 = vld [vmem:[#allocation5 + $0x540] sm:$0xff]  ;;  %v452_v9 = vld [vmem:[#allocation5 + $0x548] sm:$0xff]  ;;  %v429_v10 = vld [vmem:[#allocation5 + $0x490] sm:$0xff]  ;;  %s872_s18 = scalar_lea.sflag [#allocation4], %s1561_s8  ;;  %s1298_s27 = sshra.s32 %s900_s26, 4  ;;  %s1299_s27 = int_to_ptr.hbm [resolvable:$true] %s1298_s27 }
  0x2e   : > { %504 = vmatpush.msra.mxu1 %v464_v7  ;;  %v430_v11 = vld [vmem:[#allocation5 + $0x498] sm:$0xff]  ;;  %v439_v12 = vld [vmem:[#allocation5 + $0x4e0] sm:$0xff]  ;;  %v440_v13 = vld [vmem:[#allocation5 + $0x4e8] sm:$0xff]  ;;  %476 = vmatpush.msra.mxu0 %v451_v8  ;;  %s1300_s29 = scalar_lea.hbm %s1299_s27, 128  ;;  %s1304_s6 = scalar_lea.hbm %s1794_s2, 256 }
  0x2f   : > { %535 = vmatpush.msra.mxu2 %v441_v4  ;;  %564 = vmatpush.msra.mxu3 %v442_v5  ;;  %v417_v14 = vld [vmem:[#allocation5 + $0x430] sm:$0xff]  ;;  %v418_v15 = vld [vmem:[#allocation5 + $0x438] sm:$0xff]  ;;  %v427_v16 = vld [vmem:[#allocation5 + $0x480] sm:$0xff]  ;;  %p1301_p1 = scmp.ne.s32.totalorder %s1299_s27, %s1300_s29  ;;  %p1305_p10 = scmp.lt.s32.totalorder %s1299_s27, %s1794_s2 }
  0x30   : > { %505 = vmatpush.msra.mxu1 %v452_v9  ;;  %v428_v17 = vld [vmem:[#allocation5 + $0x488] sm:$0xff]  ;;  %477 = vmatpush.msra.mxu0 %v439_v12  ;;  %v405_v18 = vld [vmem:[#allocation5 + $0x3d0] sm:$0xff]  ;;  %v406_v19 = vld [vmem:[#allocation5 + $0x3d8] sm:$0xff]  ;;  %p1306_p12 = scmp.lt.s32.totalorder %s1304_s6, %s1300_s29 }
  0x31   : > { %536 = vmatpush.msra.mxu2 %v429_v10  ;;  %565 = vmatpush.msra.mxu3 %v430_v11  ;;  %v415_v20 = vld [vmem:[#allocation5 + $0x420] sm:$0xff]  ;;  %v416_v21 = vld [vmem:[#allocation5 + $0x428] sm:$0xff]  ;;  %v393_v22 = vld [vmem:[#allocation5 + $0x370] sm:$0xff]  ;;  %p1302_p4 = pnand %p1301_p1, %p1541_p5 }
  0x32   : > { %506 = vmatpush.msra.mxu1 %v440_v13  ;;  %478 = vmatpush.msra.mxu0 %v427_v16  ;;  %v394_v23 = vld [vmem:[#allocation5 + $0x378] sm:$0xff]  ;;  %v403_v24 = vld [vmem:[#allocation5 + $0x3c0] sm:$0xff]  ;;  %v404_v25 = vld [vmem:[#allocation5 + $0x3c8] sm:$0xff]  ;;  %p1307_p13 = por %p1306_p12, %p1305_p10 }
  0x33   : > { %537 = vmatpush.msra.mxu2 %v417_v14  ;;  %566 = vmatpush.msra.mxu3 %v418_v15  ;;  %v381_v26 = vld [vmem:[#allocation5 + $0x310] sm:$0xff]  ;;  %v382_v27 = vld [vmem:[#allocation5 + $0x318] sm:$0xff]  ;;  %v391_v28 = vld [vmem:[#allocation5 + $0x360] sm:$0xff]  ;;  %p1303_p8 = pneg %p1302_p4 }
  0x34   : > { %507 = vmatpush.msra.mxu1 %v428_v17  ;;  %479 = vmatpush.msra.mxu0 %v415_v20  ;;  %v392_v29 = vld [vmem:[#allocation5 + $0x368] sm:$0xff]  ;;  %v369_v30 = vld [vmem:[#allocation5 + $0x2b0] sm:$0xff]  ;;  %v370_v31 = vld [vmem:[#allocation5 + $0x2b8] sm:$0xff] }
  0x35   : > { %538 = vmatpush.msra.mxu2 %v405_v18  ;;  %567 = vmatpush.msra.mxu3 %v406_v19  ;;  %v379_v32 = vld [vmem:[#allocation5 + $0x300] sm:$0xff]  ;;  %v380_v33 = vld [vmem:[#allocation5 + $0x308] sm:$0xff]  ;;  %v357_v34 = vld [vmem:[#allocation5 + $0x250] sm:$0xff]  ;;  %p1308_p0 = pnand %p1307_p13, %p1303_p8 }
  0x36   : > { %508 = vmatpush.msra.mxu1 %v416_v21  ;;  %480 = vmatpush.msra.mxu0 %v403_v24  ;;  %v358_v35 = vld [vmem:[#allocation5 + $0x258] sm:$0xff]  ;;  %v367_v36 = vld [vmem:[#allocation5 + $0x2a0] sm:$0xff]  ;;  %v368_v37 = vld [vmem:[#allocation5 + $0x2a8] sm:$0xff] }
  0x37   : > { %539 = vmatpush.msra.mxu2 %v393_v22  ;;  %568 = vmatpush.msra.mxu3 %v394_v23  ;;  %v345_v38 = vld [vmem:[#allocation5 + $0x1f0] sm:$0xff]  ;;  %v346_v39 = vld [vmem:[#allocation5 + $0x1f8] sm:$0xff]  ;;  %v355_v40 = vld [vmem:[#allocation5 + $0x240] sm:$0xff] }
  0x38   : > { %509 = vmatpush.msra.mxu1 %v404_v25  ;;  %481 = vmatpush.msra.mxu0 %v391_v28  ;;  %v356_v41 = vld [vmem:[#allocation5 + $0x248] sm:$0xff]  ;;  %v333_v42 = vld [vmem:[#allocation5 + $0x190] sm:$0xff]  ;;  %v334_v43 = vld [vmem:[#allocation5 + $0x198] sm:$0xff] }
  0x39   : > { %540 = vmatpush.msra.mxu2 %v381_v26  ;;  %569 = vmatpush.msra.mxu3 %v382_v27  ;;  %v343_v44 = vld [vmem:[#allocation5 + $0x1e0] sm:$0xff]  ;;  %v344_v45 = vld [vmem:[#allocation5 + $0x1e8] sm:$0xff]  ;;  %v321_v46 = vld [vmem:[#allocation5 + $0x130] sm:$0xff] }
  0x3a   : > { %510 = vmatpush.msra.mxu1 %v392_v29  ;;  %482 = vmatpush.msra.mxu0 %v379_v32  ;;  %v322_v47 = vld [vmem:[#allocation5 + $0x138] sm:$0xff]  ;;  %v331_v48 = vld [vmem:[#allocation5 + $0x180] sm:$0xff]  ;;  %v332_v49 = vld [vmem:[#allocation5 + $0x188] sm:$0xff] }
  0x3b   : > { %541 = vmatpush.msra.mxu2 %v369_v30  ;;  %570 = vmatpush.msra.mxu3 %v370_v31  ;;  %v309_v50 = vld [vmem:[#allocation5 + $0xd0] sm:$0xff]  ;;  %v310_v51 = vld [vmem:[#allocation5 + $0xd8] sm:$0xff]  ;;  %v319_v52 = vld [vmem:[#allocation5 + $0x120] sm:$0xff] }
  0x3c   : > { %511 = vmatpush.msra.mxu1 %v380_v33  ;;  %483 = vmatpush.msra.mxu0 %v367_v36  ;;  %v320_v53 = vld [vmem:[#allocation5 + $0x128] sm:$0xff]  ;;  %v297_v54 = vld [vmem:[#allocation5 + $0x70] sm:$0xff]  ;;  %v298_v55 = vld [vmem:[#allocation5 + $0x78] sm:$0xff] }
  0x3d   : > { %542 = vmatpush.msra.mxu2 %v357_v34  ;;  %571 = vmatpush.msra.mxu3 %v358_v35  ;;  %v307_v56 = vld [vmem:[#allocation5 + $0xc0] sm:$0xff]  ;;  %v308_v57 = vld [vmem:[#allocation5 + $0xc8] sm:$0xff]  ;;  %v285_v58 = vld [vmem:[#allocation5 + $0x10] sm:$0xff] }
  0x3e   : > { %512 = vmatpush.msra.mxu1 %v368_v37  ;;  %484 = vmatpush.msra.mxu0 %v355_v40  ;;  %v286_v59 = vld [vmem:[#allocation5 + $0x18] sm:$0xff]  ;;  %v1576_v60 = vld [vmem:[%s1565_s25] sm:$0xff]  ;;  %v469_v61 = vld [vmem:[#allocation5 + $0x5d0] sm:$0xff] }
  0x3f   : > { %543 = vmatpush.msra.mxu2 %v345_v38  ;;  %572 = vmatpush.msra.mxu3 %v346_v39  ;;  %v470_v62 = vld [vmem:[#allocation5 + $0x5d8] sm:$0xff]  ;;  %v295_v63 = vld [vmem:[#allocation5 + $0x60] sm:$0xff]  ;;  %v296_v0 = vld [vmem:[#allocation5 + $0x68] sm:$0xff] }
  0x40   : > { %513 = vmatpush.msra.mxu1 %v356_v41  ;;  %485 = vmatpush.msra.mxu0 %v343_v44  ;;  %v457_v1 = vld [vmem:[#allocation5 + $0x570] sm:$0xff]  ;;  %v458_v2 = vld [vmem:[#allocation5 + $0x578] sm:$0xff]  ;;  %v283_v3 = vld [vmem:[#allocation5] sm:$0xff] }
  0x41   : > { %544 = vmatpush.msra.mxu2 %v333_v42  ;;  %573 = vmatpush.msra.mxu3 %v334_v43  ;;  %v284_v4 = vld [vmem:[#allocation5 + $0x8] sm:$0xff]  ;;  %v445_v5 = vld [vmem:[#allocation5 + $0x510] sm:$0xff]  ;;  %v446_v6 = vld [vmem:[#allocation5 + $0x518] sm:$0xff] }
  0x42   : > { %514 = vmatpush.msra.mxu1 %v344_v45  ;;  %486 = vmatpush.msra.mxu0 %v331_v48  ;;  %v467_v7 = vld [vmem:[#allocation5 + $0x5c0] sm:$0xff]  ;;  %v468_v8 = vld [vmem:[#allocation5 + $0x5c8] sm:$0xff]  ;;  %v433_v9 = vld [vmem:[#allocation5 + $0x4b0] sm:$0xff] }
  0x43   : > { %545 = vmatpush.msra.mxu2 %v321_v46  ;;  %574 = vmatpush.msra.mxu3 %v322_v47  ;;  %v434_v10 = vld [vmem:[#allocation5 + $0x4b8] sm:$0xff]  ;;  %v1583_v11 = vld [vmem:[%s1565_s25 + $0x8] sm:$0xff]  ;;  %v455_v12 = vld [vmem:[#allocation5 + $0x560] sm:$0xff] }
  0x44   : > { %515 = vmatpush.msra.mxu1 %v332_v49  ;;  %487 = vmatpush.msra.mxu0 %v319_v52  ;;  %v456_v13 = vld [vmem:[#allocation5 + $0x568] sm:$0xff]  ;;  %v421_v14 = vld [vmem:[#allocation5 + $0x450] sm:$0xff]  ;;  %v422_v15 = vld [vmem:[#allocation5 + $0x458] sm:$0xff] }
  0x45   : > { %546 = vmatpush.msra.mxu2 %v309_v50  ;;  %575 = vmatpush.msra.mxu3 %v310_v51  ;;  %v443_v16 = vld [vmem:[#allocation5 + $0x500] sm:$0xff]  ;;  %v444_v17 = vld [vmem:[#allocation5 + $0x508] sm:$0xff]  ;;  %v409_v18 = vld [vmem:[#allocation5 + $0x3f0] sm:$0xff] }
  0x46   : > { %516 = vmatpush.msra.mxu1 %v320_v53  ;;  %488 = vmatpush.msra.mxu0 %v307_v56  ;;  %v410_v19 = vld [vmem:[#allocation5 + $0x3f8] sm:$0xff]  ;;  %v431_v20 = vld [vmem:[#allocation5 + $0x4a0] sm:$0xff]  ;;  %v432_v21 = vld [vmem:[#allocation5 + $0x4a8] sm:$0xff] }
  0x47   : > { %547 = vmatpush.msra.mxu2 %v297_v54  ;;  %576 = vmatpush.msra.mxu3 %v298_v55  ;;  %v397_v22 = vld [vmem:[#allocation5 + $0x390] sm:$0xff]  ;;  %v398_v23 = vld [vmem:[#allocation5 + $0x398] sm:$0xff]  ;;  %v419_v24 = vld [vmem:[#allocation5 + $0x440] sm:$0xff] }
  0x48   : > { %517 = vmatpush.msra.mxu1 %v308_v57  ;;  %489 = vmatpush.msra.mxu0 %v295_v63  ;;  %v420_v25 = vld [vmem:[#allocation5 + $0x448] sm:$0xff]  ;;  %v385_v26 = vld [vmem:[#allocation5 + $0x330] sm:$0xff]  ;;  %v386_v27 = vld [vmem:[#allocation5 + $0x338] sm:$0xff] }
  0x49   : > { %548 = vmatpush.msra.mxu2 %v285_v58  ;;  %577 = vmatpush.msra.mxu3 %v286_v59  ;;  %v1590_v28 = vld [vmem:[%s1565_s25 + $0x10] sm:$0xff]  ;;  %v407_v29 = vld [vmem:[#allocation5 + $0x3e0] sm:$0xff]  ;;  %v408_v30 = vld [vmem:[#allocation5 + $0x3e8] sm:$0xff] }
  0x4a   : > { %549 = vmatmul.f32.vlgmr.msra.gmra.mxu2 %v1576_v60  ;;  %578 = vmatmul.f32.vlgmr.msra.gmra.mxu3 %v1576_v60  ;;  %v373_v31 = vld [vmem:[#allocation5 + $0x2d0] sm:$0xff]  ;;  %v374_v32 = vld [vmem:[#allocation5 + $0x2d8] sm:$0xff]  ;;  %v395_v33 = vld [vmem:[#allocation5 + $0x380] sm:$0xff] }
  0x4b   : > { %649 = vmatpush.msrb.mxu2 %v469_v61  ;;  %678 = vmatpush.msrb.mxu3 %v470_v62  ;;  %v396_v34 = vld [vmem:[#allocation5 + $0x388] sm:$0xff]  ;;  %v361_v35 = vld [vmem:[#allocation5 + $0x270] sm:$0xff]  ;;  %v362_v36 = vld [vmem:[#allocation5 + $0x278] sm:$0xff] }
  0x4c   : > { %518 = vmatpush.msra.mxu1 %v296_v0  ;;  %490 = vmatpush.msra.mxu0 %v283_v3  ;;  %v383_v37 = vld [vmem:[#allocation5 + $0x320] sm:$0xff]  ;;  %v384_v38 = vld [vmem:[#allocation5 + $0x328] sm:$0xff]  ;;  %v349_v39 = vld [vmem:[#allocation5 + $0x210] sm:$0xff] }
  0x4d   : > { %650 = vmatpush.msrb.mxu2 %v457_v1  ;;  %679 = vmatpush.msrb.mxu3 %v458_v2  ;;  %v350_v40 = vld [vmem:[#allocation5 + $0x218] sm:$0xff]  ;;  %v371_v41 = vld [vmem:[#allocation5 + $0x2c0] sm:$0xff]  ;;  %v372_v42 = vld [vmem:[#allocation5 + $0x2c8] sm:$0xff] }
  0x4e   : > { %519 = vmatpush.msra.mxu1 %v284_v4  ;;  %491 = vmatmul.f32.vlgmr.msra.gmra.mxu0 %v1576_v60  ;;  %v337_v43 = vld [vmem:[#allocation5 + $0x1b0] sm:$0xff]  ;;  %v338_v44 = vld [vmem:[#allocation5 + $0x1b8] sm:$0xff]  ;;  %v359_v46 = vld [vmem:[#allocation5 + $0x260] sm:$0xff] }
  0x4f   : > { %651 = vmatpush.msrb.mxu2 %v445_v5  ;;  %680 = vmatpush.msrb.mxu3 %v446_v6  ;;  %v1597_v45 = vld [vmem:[%s1565_s25 + $0x18] sm:$0xff]  ;;  %v360_v47 = vld [vmem:[#allocation5 + $0x268] sm:$0xff]  ;;  %v325_v48 = vld [vmem:[#allocation5 + $0x150] sm:$0xff] }
  0x50   : > { %520 = vmatmul.f32.vlgmr.msra.gmra.mxu1 %v1576_v60  ;;  %591 = vmatpush.msrb.mxu0 %v467_v7  ;;  %v326_v49 = vld [vmem:[#allocation5 + $0x158] sm:$0xff]  ;;  %v347_v50 = vld [vmem:[#allocation5 + $0x200] sm:$0xff]  ;;  %v348_v51 = vld [vmem:[#allocation5 + $0x208] sm:$0xff] }
  0x51   : > { %620 = vmatpush.msrb.mxu1 %v468_v8  ;;  %652 = vmatpush.msrb.mxu2 %v433_v9  ;;  %v313_v52 = vld [vmem:[#allocation5 + $0xf0] sm:$0xff]  ;;  %v314_v53 = vld [vmem:[#allocation5 + $0xf8] sm:$0xff]  ;;  %v335_v54 = vld [vmem:[#allocation5 + $0x1a0] sm:$0xff] }
  0x52   : > { %681 = vmatpush.msrb.mxu3 %v434_v10  ;;  %552 = vmatmul.f32.gmra.mxu2 %v1583_v11  ;;  %v336_v55 = vld [vmem:[#allocation5 + $0x1a8] sm:$0xff]  ;;  %v301_v56 = vld [vmem:[#allocation5 + $0x90] sm:$0xff]  ;;  %v302_v57 = vld [vmem:[#allocation5 + $0x98] sm:$0xff] }
  0x53   : > { %581 = vmatmul.f32.gmra.mxu3 %v1583_v11  ;;  %592 = vmatpush.msrb.mxu0 %v455_v12  ;;  %v323_v58 = vld [vmem:[#allocation5 + $0x140] sm:$0xff]  ;;  %v324_v59 = vld [vmem:[#allocation5 + $0x148] sm:$0xff]  ;;  %v289_v61 = vld [vmem:[#allocation5 + $0x30] sm:$0xff] }
  0x54   : > { %621 = vmatpush.msrb.mxu1 %v456_v13  ;;  %653 = vmatpush.msrb.mxu2 %v421_v14  ;;  %v290_v62 = vld [vmem:[#allocation5 + $0x38] sm:$0xff]  ;;  %v311_v63 = vld [vmem:[#allocation5 + $0xe0] sm:$0xff]  ;;  %v312_v0 = vld [vmem:[#allocation5 + $0xe8] sm:$0xff] }
  0x55   : > { %682 = vmatpush.msrb.mxu3 %v422_v15  ;;  %593 = vmatpush.msrb.mxu0 %v443_v16  ;;  %v473_v1 = vld [vmem:[#allocation5 + $0x5f0] sm:$0xff]  ;;  %v474_v2 = vld [vmem:[#allocation5 + $0x5f8] sm:$0xff]  ;;  %v299_v3 = vld [vmem:[#allocation5 + $0x80] sm:$0xff] }
  0x56   : > { %622 = vmatpush.msrb.mxu1 %v444_v17  ;;  %654 = vmatpush.msrb.mxu2 %v409_v18  ;;  %v300_v4 = vld [vmem:[#allocation5 + $0x88] sm:$0xff]  ;;  %v461_v5 = vld [vmem:[#allocation5 + $0x590] sm:$0xff]  ;;  %v462_v6 = vld [vmem:[#allocation5 + $0x598] sm:$0xff] }
  0x57   : > { %683 = vmatpush.msrb.mxu3 %v410_v19  ;;  %594 = vmatpush.msrb.mxu0 %v431_v20  ;;  %v287_v7 = vld [vmem:[#allocation5 + $0x20] sm:$0xff]  ;;  %v288_v8 = vld [vmem:[#allocation5 + $0x28] sm:$0xff]  ;;  %v449_v9 = vld [vmem:[#allocation5 + $0x530] sm:$0xff] }
  0x58   : > { %623 = vmatpush.msrb.mxu1 %v432_v21  ;;  %655 = vmatpush.msrb.mxu2 %v397_v22  ;;  %v450_v10 = vld [vmem:[#allocation5 + $0x538] sm:$0xff]  ;;  %v471_v12 = vld [vmem:[#allocation5 + $0x5e0] sm:$0xff]  ;;  %v472_v13 = vld [vmem:[#allocation5 + $0x5e8] sm:$0xff] }
  0x59   : > { %684 = vmatpush.msrb.mxu3 %v398_v23  ;;  %494 = vmatmul.f32.gmra.mxu0 %v1583_v11  ;;  %v437_v14 = vld [vmem:[#allocation5 + $0x4d0] sm:$0xff]  ;;  %v438_v15 = vld [vmem:[#allocation5 + $0x4d8] sm:$0xff]  ;;  %v459_v16 = vld [vmem:[#allocation5 + $0x580] sm:$0xff] }
  0x5a   : > { %523 = vmatmul.f32.gmra.mxu1 %v1583_v11  ;;  %595 = vmatpush.msrb.mxu0 %v419_v24  ;;  %v460_v17 = vld [vmem:[#allocation5 + $0x588] sm:$0xff]  ;;  %v425_v18 = vld [vmem:[#allocation5 + $0x470] sm:$0xff]  ;;  %v426_v19 = vld [vmem:[#allocation5 + $0x478] sm:$0xff] }
  0x5b   : > { %624 = vmatpush.msrb.mxu1 %v420_v25  ;;  %656 = vmatpush.msrb.mxu2 %v385_v26  ;;  %v447_v20 = vld [vmem:[#allocation5 + $0x520] sm:$0xff]  ;;  %v448_v21 = vld [vmem:[#allocation5 + $0x528] sm:$0xff]  ;;  %v413_v22 = vld [vmem:[#allocation5 + $0x410] sm:$0xff] }
  0x5c   : > { %685 = vmatpush.msrb.mxu3 %v386_v27  ;;  %555 = vmatmul.f32.gmra.mxu2 %v1590_v28  ;;  %v414_v23 = vld [vmem:[#allocation5 + $0x418] sm:$0xff]  ;;  %v435_v24 = vld [vmem:[#allocation5 + $0x4c0] sm:$0xff]  ;;  %v436_v25 = vld [vmem:[#allocation5 + $0x4c8] sm:$0xff] }
  0x5d   : > { %584 = vmatmul.f32.gmra.mxu3 %v1590_v28  ;;  %596 = vmatpush.msrb.mxu0 %v407_v29  ;;  %v401_v26 = vld [vmem:[#allocation5 + $0x3b0] sm:$0xff]  ;;  %v402_v27 = vld [vmem:[#allocation5 + $0x3b8] sm:$0xff]  ;;  %v423_v29 = vld [vmem:[#allocation5 + $0x460] sm:$0xff] }
  0x5e   : > { %625 = vmatpush.msrb.mxu1 %v408_v30  ;;  %657 = vmatpush.msrb.mxu2 %v373_v31  ;;  %v424_v30 = vld [vmem:[#allocation5 + $0x468] sm:$0xff]  ;;  %v389_v31 = vld [vmem:[#allocation5 + $0x350] sm:$0xff] }
  0x5f   : > { %686 = vmatpush.msrb.mxu3 %v374_v32  ;;  %597 = vmatpush.msrb.mxu0 %v395_v33  ;;  %v390_v32 = vld [vmem:[#allocation5 + $0x358] sm:$0xff]  ;;  %v411_v33 = vld [vmem:[#allocation5 + $0x400] sm:$0xff] }
  0x60   : > { %626 = vmatpush.msrb.mxu1 %v396_v34  ;;  %658 = vmatpush.msrb.mxu2 %v361_v35  ;;  %v412_v34 = vld [vmem:[#allocation5 + $0x408] sm:$0xff]  ;;  %v377_v35 = vld [vmem:[#allocation5 + $0x2f0] sm:$0xff] }
  0x61   : > { %687 = vmatpush.msrb.mxu3 %v362_v36  ;;  %598 = vmatpush.msrb.mxu0 %v383_v37  ;;  %v378_v36 = vld [vmem:[#allocation5 + $0x2f8] sm:$0xff]  ;;  %v399_v37 = vld [vmem:[#allocation5 + $0x3a0] sm:$0xff] }
  0x62   : > { %627 = vmatpush.msrb.mxu1 %v384_v38  ;;  %659 = vmatpush.msrb.mxu2 %v349_v39  ;;  %v400_v38 = vld [vmem:[#allocation5 + $0x3a8] sm:$0xff]  ;;  %v365_v39 = vld [vmem:[#allocation5 + $0x290] sm:$0xff] }
  0x63   : > { %688 = vmatpush.msrb.mxu3 %v350_v40  ;;  %497 = vmatmul.f32.gmra.mxu0 %v1590_v28  ;;  %v366_v40 = vld [vmem:[#allocation5 + $0x298] sm:$0xff] }
  0x64   : > { %526 = vmatmul.f32.gmra.mxu1 %v1590_v28  ;;  %599 = vmatpush.msrb.mxu0 %v371_v41  ;;  %v387_v41 = vld [vmem:[#allocation5 + $0x340] sm:$0xff] }
  0x65   : > { %628 = vmatpush.msrb.mxu1 %v372_v42  ;;  %660 = vmatpush.msrb.mxu2 %v337_v43  ;;  %v388_v42 = vld [vmem:[#allocation5 + $0x348] sm:$0xff]  ;;  %v353_v43 = vld [vmem:[#allocation5 + $0x230] sm:$0xff] }
  0x66   : > { %689 = vmatpush.msrb.mxu3 %v338_v44  ;;  %558 = vmatmul.f32.gmra.mxu2 %v1597_v45  ;;  %v354_v44 = vld [vmem:[#allocation5 + $0x238] sm:$0xff] }
  0x67   : > { %587 = vmatmul.f32.gmra.mxu3 %v1597_v45  ;;  %600 = vmatpush.msrb.mxu0 %v359_v46  ;;  %v375_v46 = vld [vmem:[#allocation5 + $0x2e0] sm:$0xff] }
  0x68   : > { %629 = vmatpush.msrb.mxu1 %v360_v47  ;;  %661 = vmatpush.msrb.mxu2 %v325_v48  ;;  %v376_v47 = vld [vmem:[#allocation5 + $0x2e8] sm:$0xff]  ;;  %v341_v48 = vld [vmem:[#allocation5 + $0x1d0] sm:$0xff] }
  0x69   : > { %690 = vmatpush.msrb.mxu3 %v326_v49  ;;  %601 = vmatpush.msrb.mxu0 %v347_v50  ;;  %v342_v49 = vld [vmem:[#allocation5 + $0x1d8] sm:$0xff]  ;;  %v363_v50 = vld [vmem:[#allocation5 + $0x280] sm:$0xff] }
  0x6a   : > { %630 = vmatpush.msrb.mxu1 %v348_v51  ;;  %662 = vmatpush.msrb.mxu2 %v313_v52  ;;  %v364_v51 = vld [vmem:[#allocation5 + $0x288] sm:$0xff]  ;;  %v329_v52 = vld [vmem:[#allocation5 + $0x170] sm:$0xff] }
  0x6b   : > { %691 = vmatpush.msrb.mxu3 %v314_v53  ;;  %602 = vmatpush.msrb.mxu0 %v335_v54  ;;  %v330_v53 = vld [vmem:[#allocation5 + $0x178] sm:$0xff]  ;;  %v351_v54 = vld [vmem:[#allocation5 + $0x220] sm:$0xff] }
  0x6c   : > { %631 = vmatpush.msrb.mxu1 %v336_v55  ;;  %663 = vmatpush.msrb.mxu2 %v301_v56  ;;  %v352_v55 = vld [vmem:[#allocation5 + $0x228] sm:$0xff]  ;;  %v317_v56 = vld [vmem:[#allocation5 + $0x110] sm:$0xff] }
  0x6d   : > { %692 = vmatpush.msrb.mxu3 %v302_v57  ;;  %500 = vmatmul.f32.gmra.mxu0 %v1597_v45  ;;  %v318_v57 = vld [vmem:[#allocation5 + $0x118] sm:$0xff] }
  0x6e   : > { %529 = vmatmul.f32.gmra.mxu1 %v1597_v45  ;;  %603 = vmatpush.msrb.mxu0 %v323_v58  ;;  %v339_v58 = vld [vmem:[#allocation5 + $0x1c0] sm:$0xff] }
  0x6f   : > { %632 = vmatpush.msrb.mxu1 %v324_v59  ;;  %664 = vmatpush.msrb.mxu2 %v289_v61  ;;  %v340_v59 = vld [vmem:[#allocation5 + $0x1c8] sm:$0xff]  ;;  %v305_v61 = vld [vmem:[#allocation5 + $0xb0] sm:$0xff] }
  0x70   : > { %693 = vmatpush.msrb.mxu3 %v290_v62  ;;  %604 = vmatpush.msrb.mxu0 %v311_v63  ;;  %v306_v62 = vld [vmem:[#allocation5 + $0xb8] sm:$0xff]  ;;  %v327_v63 = vld [vmem:[#allocation5 + $0x160] sm:$0xff] }
  0x71   : > { %633 = vmatpush.msrb.mxu1 %v312_v0  ;;  %665 = vmatmul.f32.vlgmr.msrb.gmra.mxu2 %v1576_v60  ;;  %v328_v0 = vld [vmem:[#allocation5 + $0x168] sm:$0xff] }
  0x72   : > { %694 = vmatmul.f32.vlgmr.msrb.gmra.mxu3 %v1576_v60  ;;  %765 = vmatpush.msra.mxu2 %v473_v1  ;;  %v293_v1 = vld [vmem:[#allocation5 + $0x50] sm:$0xff] }
  0x73   : > { %794 = vmatpush.msra.mxu3 %v474_v2  ;;  %605 = vmatpush.msrb.mxu0 %v299_v3  ;;  %v294_v2 = vld [vmem:[#allocation5 + $0x58] sm:$0xff]  ;;  %v315_v3 = vld [vmem:[#allocation5 + $0x100] sm:$0xff] }
  0x74   : > { %634 = vmatpush.msrb.mxu1 %v300_v4  ;;  %766 = vmatpush.msra.mxu2 %v461_v5  ;;  %v316_v4 = vld [vmem:[#allocation5 + $0x108] sm:$0xff]  ;;  %v303_v5 = vld [vmem:[#allocation5 + $0xa0] sm:$0xff] }
  0x75   : > { %795 = vmatpush.msra.mxu3 %v462_v6  ;;  %606 = vmatpush.msrb.mxu0 %v287_v7  ;;  %v304_v6 = vld [vmem:[#allocation5 + $0xa8] sm:$0xff]  ;;  %v291_v7 = vld [vmem:[#allocation5 + $0x40] sm:$0xff] }
  0x76   : > { %635 = vmatpush.msrb.mxu1 %v288_v8  ;;  %767 = vmatpush.msra.mxu2 %v449_v9  ;;  %v292_v8 = vld [vmem:[#allocation5 + $0x48] sm:$0xff] }
  0x77   : > { %796 = vmatpush.msra.mxu3 %v450_v10  ;;  %607 = vmatmul.f32.vlgmr.msrb.gmra.mxu0 %v1576_v60 }
  0x78   : > { %636 = vmatmul.f32.vlgmr.msrb.gmra.mxu1 %v1576_v60  ;;  %707 = vmatpush.msra.mxu0 %v471_v12 }
  0x79   : > { %736 = vmatpush.msra.mxu1 %v472_v13  ;;  %768 = vmatpush.msra.mxu2 %v437_v14 }
  0x7a   : > { %797 = vmatpush.msra.mxu3 %v438_v15  ;;  %668 = vmatmul.f32.gmra.mxu2 %v1583_v11 }
  0x7b   : > { %697 = vmatmul.f32.gmra.mxu3 %v1583_v11  ;;  %708 = vmatpush.msra.mxu0 %v459_v16 }
  0x7c   : > { %737 = vmatpush.msra.mxu1 %v460_v17  ;;  %769 = vmatpush.msra.mxu2 %v425_v18 }
  0x7d   : > { %798 = vmatpush.msra.mxu3 %v426_v19  ;;  %709 = vmatpush.msra.mxu0 %v447_v20 }
  0x7e   : > { %738 = vmatpush.msra.mxu1 %v448_v21  ;;  %770 = vmatpush.msra.mxu2 %v413_v22 }
  0x7f   : > { %799 = vmatpush.msra.mxu3 %v414_v23  ;;  %710 = vmatpush.msra.mxu0 %v435_v24 }
  0x80   : > { %739 = vmatpush.msra.mxu1 %v436_v25  ;;  %771 = vmatpush.msra.mxu2 %v401_v26 }
  0x81   : > { %800 = vmatpush.msra.mxu3 %v402_v27  ;;  %610 = vmatmul.f32.gmra.mxu0 %v1583_v11 }
  0x82   : > { %639 = vmatmul.f32.gmra.mxu1 %v1583_v11  ;;  %711 = vmatpush.msra.mxu0 %v423_v29 }
  0x83   : > { %740 = vmatpush.msra.mxu1 %v424_v30  ;;  %772 = vmatpush.msra.mxu2 %v389_v31 }
  0x84   : > { %801 = vmatpush.msra.mxu3 %v390_v32  ;;  %671 = vmatmul.f32.gmra.mxu2 %v1590_v28 }
  0x85   : > { %700 = vmatmul.f32.gmra.mxu3 %v1590_v28  ;;  %712 = vmatpush.msra.mxu0 %v411_v33 }
  0x86   : > { %741 = vmatpush.msra.mxu1 %v412_v34  ;;  %773 = vmatpush.msra.mxu2 %v377_v35 }
  0x87   : > { %802 = vmatpush.msra.mxu3 %v378_v36  ;;  %713 = vmatpush.msra.mxu0 %v399_v37 }
  0x88   : > { %742 = vmatpush.msra.mxu1 %v400_v38  ;;  %774 = vmatpush.msra.mxu2 %v365_v39 }
  0x89   : > { %803 = vmatpush.msra.mxu3 %v366_v40  ;;  %714 = vmatpush.msra.mxu0 %v387_v41 }
  0x8a   : > { %743 = vmatpush.msra.mxu1 %v388_v42  ;;  %775 = vmatpush.msra.mxu2 %v353_v43 }
  0x8b   : > { %804 = vmatpush.msra.mxu3 %v354_v44  ;;  %613 = vmatmul.f32.gmra.mxu0 %v1590_v28 }
  0x8c   : > { %642 = vmatmul.f32.gmra.mxu1 %v1590_v28  ;;  %715 = vmatpush.msra.mxu0 %v375_v46 }
  0x8d   : > { %744 = vmatpush.msra.mxu1 %v376_v47  ;;  %776 = vmatpush.msra.mxu2 %v341_v48 }
  0x8e   : > { %805 = vmatpush.msra.mxu3 %v342_v49  ;;  %674 = vmatmul.f32.gmra.mxu2 %v1597_v45 }
  0x8f   : > { %703 = vmatmul.f32.gmra.mxu3 %v1597_v45  ;;  %716 = vmatpush.msra.mxu0 %v363_v50 }
  0x90   : > { %745 = vmatpush.msra.mxu1 %v364_v51  ;;  %777 = vmatpush.msra.mxu2 %v329_v52 }
  0x91   : > { %806 = vmatpush.msra.mxu3 %v330_v53  ;;  %717 = vmatpush.msra.mxu0 %v351_v54 }
  0x92   : > { %746 = vmatpush.msra.mxu1 %v352_v55  ;;  %778 = vmatpush.msra.mxu2 %v317_v56 }
  0x93   : > { %807 = vmatpush.msra.mxu3 %v318_v57  ;;  %718 = vmatpush.msra.mxu0 %v339_v58 }
  0x94   : > { %747 = vmatpush.msra.mxu1 %v340_v59  ;;  %779 = vmatpush.msra.mxu2 %v305_v61 }
  0x95   : > { %808 = vmatpush.msra.mxu3 %v306_v62  ;;  %616 = vmatmul.f32.gmra.mxu0 %v1597_v45 }
  0x96   : > { %645 = vmatmul.f32.gmra.mxu1 %v1597_v45  ;;  %719 = vmatpush.msra.mxu0 %v327_v63 }
  0x97   : > { %748 = vmatpush.msra.mxu1 %v328_v0  ;;  %780 = vmatpush.msra.mxu2 %v293_v1 }
  0x98   : > { %809 = vmatpush.msra.mxu3 %v294_v2  ;;  %720 = vmatpush.msra.mxu0 %v315_v3 }
  0x99   : > { %749 = vmatpush.msra.mxu1 %v316_v4  ;;  %781 = vmatmul.f32.vlgmr.msra.gmra.mxu2 %v1576_v60 }
  0x9a   : > { %810 = vmatmul.f32.vlgmr.msra.gmra.mxu3 %v1576_v60  ;;  %721 = vmatpush.msra.mxu0 %v303_v5 }
  0x9b   : > { %750 = vmatpush.msra.mxu1 %v304_v6 }
  0x9c   : > { %722 = vmatpush.msra.mxu0 %v291_v7 }
  0x9d   : > { %751 = vmatpush.msra.mxu1 %v292_v8  ;;  %723 = vmatmul.f32.vlgmr.msra.gmra.mxu0 %v1576_v60 }
  0x9e   : > { %752 = vmatmul.f32.vlgmr.msra.gmra.mxu1 %v1576_v60 }
  0xa1   : > { %784 = vmatmul.f32.gmra.mxu2 %v1583_v11 }
  0xa2   : > { %813 = vmatmul.f32.gmra.mxu3 %v1583_v11 }
  0xa5   : > { %726 = vmatmul.f32.gmra.mxu0 %v1583_v11 }
  0xa6   : > { %755 = vmatmul.f32.gmra.mxu1 %v1583_v11 }
  0xa9   : > { %787 = vmatmul.f32.gmra.mxu2 %v1590_v28 }
  0xaa   : > { %816 = vmatmul.f32.gmra.mxu3 %v1590_v28 }
  0xad   : > { %729 = vmatmul.f32.gmra.mxu0 %v1590_v28 }
  0xae   : > { %758 = vmatmul.f32.gmra.mxu1 %v1590_v28 }
  0xb1   : > { %790 = vmatmul.f32.gmra.mxu2 %v1597_v45 }
  0xb2   : > { %819 = vmatmul.f32.gmra.mxu3 %v1597_v45 }
  0xb5   : > { %732 = vmatmul.f32.gmra.mxu0 %v1597_v45 }
  0xb6   : > { %761 = vmatmul.f32.gmra.mxu1 %v1597_v45 }
  0xcb   : > { %v492_v60 = vpop.f32.mrf.mxu0 }
  0xcc   : > { %823 = vst [vmem:[%s1639_s22] sm:$0xff] %v492_v60 }
  0xcd   : > { %v521_v11 = vpop.f32.mrf.mxu1  ;;  %v550_v28 = vpop.f32.mrf.mxu2 }
  0xce   : > { %v579_v9 = vpop.f32.mrf.mxu3  ;;  %824 = vst [vmem:[%s1639_s22 + $0x8] sm:$0xff] %v521_v11 }
  0xcf   : > { %825 = vst [vmem:[%s1639_s22 + $0x10] sm:$0xff] %v550_v28 }
  0xd0   : > { %826 = vst [vmem:[%s1639_s22 + $0x18] sm:$0xff] %v579_v9 }
  0xd5   : > { %v553_v45 = vpop.f32.mrf.mxu2 }
  0xd6   : > { %v582_v10 = vpop.f32.mrf.mxu3  ;;  %v495_v12 = vpop.f32.mrf.mxu0  ;;  %829 = vst [vmem:[%s1639_s22 + $0x30] sm:$0xff] %v553_v45 }
  0xd7   : > { %v524_v13 = vpop.f32.mrf.mxu1  ;;  %827 = vst [vmem:[%s1639_s22 + $0x20] sm:$0xff] %v495_v12 }
  0xd8   : > { %828 = vst [vmem:[%s1639_s22 + $0x28] sm:$0xff] %v524_v13 }
  0xd9   : > { %830 = vst [vmem:[%s1639_s22 + $0x38] sm:$0xff] %v582_v10 }
  0xdf   : > { %v556_v14 = vpop.f32.mrf.mxu2 }
  0xe0   : > { %v585_v15 = vpop.f32.mrf.mxu3  ;;  %v498_v16 = vpop.f32.mrf.mxu0  ;;  %833 = vst [vmem:[%s1639_s22 + $0x50] sm:$0xff] %v556_v14 }
  0xe1   : > { %v527_v17 = vpop.f32.mrf.mxu1  ;;  %831 = vst [vmem:[%s1639_s22 + $0x40] sm:$0xff] %v498_v16 }
  0xe2   : > { %832 = vst [vmem:[%s1639_s22 + $0x48] sm:$0xff] %v527_v17 }
  0xe3   : > { %834 = vst [vmem:[%s1639_s22 + $0x58] sm:$0xff] %v585_v15 }
  0xe9   : > { %v559_v18 = vpop.f32.mrf.mxu2 }
  0xea   : > { %v588_v19 = vpop.f32.mrf.mxu3  ;;  %v501_v20 = vpop.f32.mrf.mxu0  ;;  %837 = vst [vmem:[%s1639_s22 + $0x70] sm:$0xff] %v559_v18 }
  0xeb   : > { %v530_v21 = vpop.f32.mrf.mxu1  ;;  %835 = vst [vmem:[%s1639_s22 + $0x60] sm:$0xff] %v501_v20 }
  0xec   : > { %836 = vst [vmem:[%s1639_s22 + $0x68] sm:$0xff] %v530_v21 }
  0xed   : > { %838 = vst [vmem:[%s1639_s22 + $0x78] sm:$0xff] %v588_v19 }
  0xee   : > { %1311 = shalt.err (!%p1308_p0)
}
  0xef   : > { %s1437_s8 = smov 512   ;;  %s1438_s25 = smov 32  }
  0xf0   : > { %1141 = dma.vmem_to_hbm [thread:$0]  (%p1541_p5), %s898_s12, 2048, %s900_s26, %s872_s18, %s1437_s8, %s1437_s8, %s1438_s25  }
  0xf1   : > { %s1683_s22 = scalar_lea.vmem [#allocation8], %s1636_s1  ;;  %s916_s9 = scalar_lea.hbm %s1795_s3, %s1653_s23 }
  0xf2   : > { %s876_s12 = sand.u32 1, %s1495_s21   ;;  %s917_s26 = sshll.u32 %s1683_s22, 4  ;;  %s918_s26 = int_to_ptr.vmem [resolvable:$true] %s917_s26 }
  0xf3   : > { %s1703_s18 = sshll.u32 %s916_s9, 4  ;;  %s1710_s27 = scalar_lea.sflag [#allocation9], %s876_s12  ;;  %s920_s18 = int_to_ptr.hbm [resolvable:$true] %s1703_s18 }
  0xf4   : > { %v608_v22 = vpop.f32.mrf.mxu0  ;;  %v666_v24 = vpop.f32.mrf.mxu2  ;;  %s1326_s29 = sshra.s32 %s920_s18, 4  ;;  %s1332_s6 = scalar_lea.hbm %s1795_s3, 256  ;;  %s1327_s29 = int_to_ptr.hbm [resolvable:$true] %s1326_s29 }
  0xf5   : > { %v637_v23 = vpop.f32.mrf.mxu1  ;;  %839 = vst [vmem:[%s1683_s22] sm:$0xff] %v608_v22  ;;  %v695_v25 = vpop.f32.mrf.mxu3  ;;  %s1328_s21 = scalar_lea.hbm %s1327_s29, 128  ;;  %p1333_p2 = scmp.lt.s32.totalorder %s1327_s29, %s1795_s3 }
  0xf6   : > { %840 = vst [vmem:[%s1683_s22 + $0x8] sm:$0xff] %v637_v23  ;;  %p1329_p3 = scmp.ne.s32.totalorder %s1327_s29, %s1328_s21  ;;  %p1334_p1 = scmp.lt.s32.totalorder %s1332_s6, %s1328_s21 }
  0xf7   : > { %841 = vst [vmem:[%s1683_s22 + $0x10] sm:$0xff] %v666_v24 }
  0xf8   : > { %842 = vst [vmem:[%s1683_s22 + $0x18] sm:$0xff] %v695_v25  ;;  %p1330_p7 = pnand %p1329_p3, %p1541_p5  ;;  %p1335_p4 = por %p1334_p1, %p1333_p2 }
  0xfa   : > { %p1331_p9 = pneg %p1330_p7 }
  0xfc   : > { %p1336_p8 = pnand %p1335_p4, %p1331_p9 }
  0xfd   : > { %v669_v26 = vpop.f32.mrf.mxu2 }
  0xfe   : > { %v698_v27 = vpop.f32.mrf.mxu3  ;;  %v611_v29 = vpop.f32.mrf.mxu0  ;;  %845 = vst [vmem:[%s1683_s22 + $0x30] sm:$0xff] %v669_v26 }
  0xff   : > { %v640_v30 = vpop.f32.mrf.mxu1  ;;  %843 = vst [vmem:[%s1683_s22 + $0x20] sm:$0xff] %v611_v29 }
 0x100   : > { %844 = vst [vmem:[%s1683_s22 + $0x28] sm:$0xff] %v640_v30 }
 0x101   : > { %846 = vst [vmem:[%s1683_s22 + $0x38] sm:$0xff] %v698_v27 }
 0x107   : > { %v672_v31 = vpop.f32.mrf.mxu2 }
 0x108   : > { %v701_v32 = vpop.f32.mrf.mxu3  ;;  %v614_v33 = vpop.f32.mrf.mxu0  ;;  %849 = vst [vmem:[%s1683_s22 + $0x50] sm:$0xff] %v672_v31 }
 0x109   : > { %v643_v34 = vpop.f32.mrf.mxu1  ;;  %847 = vst [vmem:[%s1683_s22 + $0x40] sm:$0xff] %v614_v33 }
 0x10a   : > { %848 = vst [vmem:[%s1683_s22 + $0x48] sm:$0xff] %v643_v34 }
 0x10b   : > { %850 = vst [vmem:[%s1683_s22 + $0x58] sm:$0xff] %v701_v32 }
 0x111   : > { %v675_v35 = vpop.f32.mrf.mxu2 }
 0x112   : > { %v704_v36 = vpop.f32.mrf.mxu3  ;;  %v617_v37 = vpop.f32.mrf.mxu0  ;;  %853 = vst [vmem:[%s1683_s22 + $0x70] sm:$0xff] %v675_v35 }
 0x113   : > { %v646_v38 = vpop.f32.mrf.mxu1  ;;  %851 = vst [vmem:[%s1683_s22 + $0x60] sm:$0xff] %v617_v37 }
 0x114   : > { %852 = vst [vmem:[%s1683_s22 + $0x68] sm:$0xff] %v646_v38 }
 0x115   : > { %854 = vst [vmem:[%s1683_s22 + $0x78] sm:$0xff] %v704_v36 }
 0x116   : > { %1339 = shalt.err (!%p1336_p8)
}
 0x117   : > { %1142 = dma.vmem_to_hbm [thread:$0]  (%p1541_p5), %s918_s26, 2048, %s920_s18, %s1710_s27, %s1437_s8, %s1437_s8, %s1438_s25  }
 0x118   : > { %s1727_s22 = scalar_lea.vmem [#allocation10], %s1636_s1  ;;  %s936_s7 = scalar_lea.hbm %s1796_s4, %s1653_s23 }
 0x119   : > { %s1745_s9 = sshll.u32 %s936_s7, 4  ;;  %s937_s12 = sshll.u32 %s1727_s22, 4  ;;  %s940_s9 = int_to_ptr.hbm [resolvable:$true] %s1745_s9  ;;  %s938_s12 = int_to_ptr.vmem [resolvable:$true] %s937_s12 }
 0x11a   : > { %v724_v39 = vpop.f32.mrf.mxu0  ;;  %s1354_s26 = sshra.s32 %s940_s9, 4  ;;  %s1360_s21 = scalar_lea.hbm %s1796_s4, 256  ;;  %s1355_s26 = int_to_ptr.hbm [resolvable:$true] %s1354_s26 }
 0x11b   : > { %v753_v40 = vpop.f32.mrf.mxu1  ;;  %855 = vst [vmem:[%s1727_s22] sm:$0xff] %v724_v39  ;;  %s1356_s18 = scalar_lea.hbm %s1355_s26, 128  ;;  %p1361_p0 = scmp.lt.s32.totalorder %s1355_s26, %s1796_s4 }
 0x11c   : > { %856 = vst [vmem:[%s1727_s22 + $0x8] sm:$0xff] %v753_v40  ;;  %v782_v41 = vpop.f32.mrf.mxu2  ;;  %p1357_p10 = scmp.ne.s32.totalorder %s1355_s26, %s1356_s18  ;;  %p1362_p3 = scmp.lt.s32.totalorder %s1360_s21, %s1356_s18 }
 0x11d   : > { %v811_v42 = vpop.f32.mrf.mxu3  ;;  %857 = vst [vmem:[%s1727_s22 + $0x10] sm:$0xff] %v782_v41 }
 0x11e   : > { %858 = vst [vmem:[%s1727_s22 + $0x18] sm:$0xff] %v811_v42  ;;  %p1358_p12 = pnand %p1357_p10, %p1541_p5  ;;  %p1363_p7 = por %p1362_p3, %p1361_p0 }
 0x120   : > { %p1359_p13 = pneg %p1358_p12 }
 0x122   : > { %v727_v43 = vpop.f32.mrf.mxu0  ;;  %p1364_p9 = pnand %p1363_p7, %p1359_p13 }
 0x123   : > { %v756_v44 = vpop.f32.mrf.mxu1  ;;  %859 = vst [vmem:[%s1727_s22 + $0x20] sm:$0xff] %v727_v43 }
 0x124   : > { %860 = vst [vmem:[%s1727_s22 + $0x28] sm:$0xff] %v756_v44  ;;  %v785_v46 = vpop.f32.mrf.mxu2 }
 0x125   : > { %v814_v47 = vpop.f32.mrf.mxu3  ;;  %861 = vst [vmem:[%s1727_s22 + $0x30] sm:$0xff] %v785_v46 }
 0x126   : > { %862 = vst [vmem:[%s1727_s22 + $0x38] sm:$0xff] %v814_v47 }
 0x12a   : > { %v730_v48 = vpop.f32.mrf.mxu0 }
 0x12b   : > { %v759_v49 = vpop.f32.mrf.mxu1  ;;  %863 = vst [vmem:[%s1727_s22 + $0x40] sm:$0xff] %v730_v48 }
 0x12c   : > { %864 = vst [vmem:[%s1727_s22 + $0x48] sm:$0xff] %v759_v49  ;;  %v788_v50 = vpop.f32.mrf.mxu2 }
 0x12d   : > { %v817_v51 = vpop.f32.mrf.mxu3  ;;  %865 = vst [vmem:[%s1727_s22 + $0x50] sm:$0xff] %v788_v50 }
 0x12e   : > { %866 = vst [vmem:[%s1727_s22 + $0x58] sm:$0xff] %v817_v51 }
 0x132   : > { %v733_v52 = vpop.f32.mrf.mxu0 }
 0x133   : > { %v762_v53 = vpop.f32.mrf.mxu1  ;;  %867 = vst [vmem:[%s1727_s22 + $0x60] sm:$0xff] %v733_v52 }
 0x134   : > { %868 = vst [vmem:[%s1727_s22 + $0x68] sm:$0xff] %v762_v53  ;;  %v791_v54 = vpop.f32.mrf.mxu2 }
 0x135   : > { %v820_v55 = vpop.f32.mrf.mxu3  ;;  %869 = vst [vmem:[%s1727_s22 + $0x70] sm:$0xff] %v791_v54 }
 0x136   : > { %870 = vst [vmem:[%s1727_s22 + $0x78] sm:$0xff] %v820_v55 }
 0x137   : > { %1367 = shalt.err (!%p1364_p9)
}
 0x138   : > { %1143 = dma.vmem_to_hbm [thread:$0]  (%p1541_p5), %s938_s12, 2048, %s940_s9, %s1710_s27, %s1437_s8, %s1437_s8, %s1438_s25  }
 0x139 PF: > { %s954_s6 = sand.u32 1, %s1410_s15   ;;  %p1156_p2 = pnand %p1110_p11, %p1511_p6 }
 0x13a   : > { %s955_s11 = scalar_lea.sflag [#allocation4], %s954_s6 }
 0x13b   : > { %p1157_p1 = pneg %p1156_p2 }
 0x13d   : > { %1401 = dma.done.wait (%p1157_p1), %s955_s11, 2048  }
 0x13e   : > { %1403 = vsyncadd (%p1157_p1), %s955_s11, 4294965248  ;;  %s1807_s13 = sadd.s32 4294967294, %s1430_s20  }
 0x13f   : > { %s964_s10 = sand.u32 1, %s1807_s13  }
 0x140   : > { %s965_s22 = scalar_lea.sflag [#allocation9], %s964_s10 }
 0x141   : > { %1405 = dma.done.wait (%p1157_p1), %s965_s22, 4096  }
 0x142   : > { %1407 = vsyncadd (%p1157_p1), %s965_s22, 4294963200  ;;  %s25_s20 = sadd.s32 1, %s1430_s20   ;;  %s1808_s24 = sld [smem:[#allocation15_spill]] }
 0x143   : > { %p22_p5 = scmp.ge.s32.totalorder %s25_s20, 4   ;;  %s1809_s15 = smov %s1414_s16 }
 0x144   : > { %s1810_s16 = smov %s1418_s17  ;;  %s1811_s17 = smov %s1550_s14 }
 0x145   : > { %s1812_s18 = smov %s1426_s19  ;;  %24 = sbr.rel (!%p22_p5) target bundleno = 11 (0xb), region = 109 }
 0x148   : > { %s1813_s19 = smov %s1808_s24 }
 0x14a   :  { %981 = vsyncpa [#allocation3], 1 }
 0x14b   :  { %983 = vsyncpa [#allocation3 + $0x1], 1 }
 0x14c   :  { %984 = vsyncpa [#allocation6], 1 }
 0x14d   :  { %985 = vsyncpa [#allocation4], 1 }
 0x14e   :  { %987 = vsyncpa [#allocation4 + $0x1], 1 }
 0x14f   :  { %988 = vsyncpa [#allocation9], 1 }
 0x150   :  { %990 = vsyncpa [#allocation9 + $0x1], 1 }

// kernel: tpu_custom_call.1
= control target key start
LH: loop header
LB: loop body
LE: loop exit
PB: predicated region body
PF: predicated region fallthrough
CT: control target
= control target key end

     0   :  { %s1792_s0 = inlined_call_operand.hbm [shape: f32[2,32,128], index: 0, kind: input, shape index: {}]   ;;  %s1793_s1 = inlined_call_operand.hbm [shape: f32[128,1536], index: 1, kind: input, shape index: {}]   ;;  %s1794_s2 = inlined_call_operand.hbm [shape: f32[2,32,512], index: 2, kind: output, shape index: {0}]   ;;  %s1795_s3 = inlined_call_operand.hbm [shape: f32[2,32,512], index: 3, kind: output, shape index: {1}]   ;;  %s1796_s4 = inlined_call_operand.hbm [shape: f32[2,32,512], index: 4, kind: output, shape index: {2}]  }
   0x1   :  { %1799 = sst [smem:[#allocation16_spill]] %s1793_s1 }
   0x2   :  { %10 = vsyncpa [#allocation3], 0 }
   0x3   :  { %12 = vsyncpa [#allocation3 + $0x1], 0 }
   0x4   :  { %13 = vsyncpa [#allocation6], 0 }
   0x5   :  { %14 = vsyncpa [#allocation4], 0 }
   0x6   :  { %16 = vsyncpa [#allocation4 + $0x1], 0 }
   0x7   :  { %17 = vsyncpa [#allocation9], 0 }
   0x8   :  { %19 = vsyncpa [#allocation9 + $0x1], 0  ;;  %s1464_s15 = smov 0   ;;  %s1466_s16 = smov 0  }
   0x9   :  { %s1468_s17 = smov 0   ;;  %s1470_s18 = smov 0  }
   0xa   :  { %s1472_s19 = smov 0   ;;  %s1474_s20 = smov 0  }
   0xb LB: > { %s1495_s21 = sadd.s32 4294967295, %s1430_s20   ;;  %s1797_s22 = sadd.s32 4294967294, %s1430_s20   ;;  %s1430_s20 = sphi %s1474_s20, %s25_s20   ;;  %s1426_s19 = sphi %s1472_s19, %s1813_s19   ;;  %s1422_s18 = sphi %s1470_s18, %s1812_s18   ;;  %s1418_s17 = sphi %s1468_s17, %s1811_s17   ;;  %s1414_s16 = sphi %s1466_s16, %s1810_s16   ;;  %s1410_s15 = sphi %s1464_s15, %s1809_s15  }
   0xc   : > { %p59_p0 = scmp.ne.s32.totalorder %s1414_s16, %s1410_s15  ;;  %p60_p1 = scmp.eq.s32.totalorder %s1495_s21, 0 }
   0xd   : > { %p106_p2 = scmp.eq.s32.totalorder %s1495_s21, 1  ;;  %p112_p3 = scmp.eq.s32.totalorder %s1797_s22, 1 }
   0xe   : > { %p1506_p4 = por %p60_p1, %p59_p0  ;;  %p1108_p5 = scmp.ge.s32.totalorder %s1430_s20, 1 }
   0xf   : > { %p1511_p6 = por %p112_p3, %p59_p0  ;;  %p175_p7 = scmp.lt.s32.totalorder %s1430_s20, 3 }
  0x10   : > { %s1802_s1 = sld [smem:[#allocation16_spill]]  ;;  %s1432_s29 = smov [#allocation5]  }
  0x11   : > { %p1519_p8 = pnand %p1108_p5, %p175_p7  ;;  %s188_s30 = sshll.u32 %s1432_s29, 4  ;;  %s189_s30 = int_to_ptr.vmem [resolvable:$true] %s188_s30 }
  0x12   : > { %p1110_p11 = scmp.ge.s32.totalorder %s1430_s20, 2  ;;  %s1433_s5 = smov 1536  }
  0x13   : > { %p1147_p9 = pneg %p1519_p8  ;;  %s1434_s6 = smov 96  }
  0x14   : > { %s37_s7 = sadd.s32 1, %s1426_s19  ;;  %s46_s8 = sadd.s32 1, %s1418_s17 }
  0x15   : > { %p1148_p10 = pnand %p1147_p9, %p60_p1  ;;  %p39_p12 = scmp.ge.s32.totalorder %s37_s7, 2 }
  0x16   : > { %s186_s27 = sshll.u32 %s1802_s1, 4  ;;  %p53_p13 = scmp.ne.s32.totalorder %s1418_s17, %s1414_s16  ;;  %s187_s27 = int_to_ptr.hbm [resolvable:$true] %s186_s27 }
  0x17   : > { %1150 = dma.hbm_to_vmem [thread:$0]  (!%p1148_p10), %s187_s27, 24576, %s189_s30, [#allocation6], %s1433_s5, %s1433_s5, %s1434_s6  }
  0x18   : > { %p54_p0 = scmp.eq.s32.totalorder %s1430_s20, 0  ;;  %s1815_s7 = smov (%p39_p12, %s37_s7), 0 }
  0x19   : > { %1804 = sst [smem:[#allocation15_spill]] %s1815_s7  ;;  %p1541_p5 = por %p106_p2, %p53_p13 }
  0x1a   : > { %p1535_p3 = por %p54_p0, %p53_p13  ;;  %s41_s11 = ssub.s32 %s1426_s19, %s1815_s7 }
  0x1b   : > { %p1166_p7 = scmp.lt.s32.totalorder %s1430_s20, 2  ;;  %p44_p9 = scmp.eq.s32.totalorder %s41_s11, 0 }
  0x1c   : > { %s202_s12 = sand.u32 1, %s1418_s17   ;;  %s1131_s25 = sshll.u32 %s1426_s19, 5 }
  0x1d   : > { %s1111_s13 = sshll.u32 %s202_s12, 5  ;;  %s213_s29 = scalar_lea.hbm %s1792_s0, %s1131_s25 }
  0x1e   : > { %s1550_s14 = scalar_select %p44_p9, %s1418_s17, %s46_s8  }
  0x1f   : > { %s206_s30 = scalar_lea.vmem [#allocation2], %s1111_s13  ;;  %s214_s6 = sshll.u32 %s213_s29, 4  ;;  %s215_s6 = int_to_ptr.hbm [resolvable:$true] %s214_s6 }
  0x20   : > { %s216_s5 = sshll.u32 %s206_s30, 4  ;;  %p1152_p2 = pnand %p1166_p7, %p1535_p3  ;;  %s217_s5 = int_to_ptr.vmem [resolvable:$true] %s216_s5 }
  0x21   : > { %s203_s22 = scalar_lea.sflag [#allocation3], %s202_s12  ;;  %s1435_s1 = smov 128  }
  0x22   : > { %s1436_s7 = smov 8   ;;  %228 = sbr.rel (%p1519_p8) target bundleno = 313 (0x139), region = 28 }
  0x23   : > { %1154 = dma.hbm_to_vmem [thread:$0]  (!%p1152_p2), %s215_s6, 512, %s217_s5, %s203_s22, %s1435_s1, %s1435_s1, %s1436_s7  }
  0x24   : > { %s1561_s8 = sand.u32 (!%p1519_p8), 1, %s1414_s16  }
  0x25   : > { %s1115_s11 = sshll.u32 (!%p1519_p8), %s1561_s8, 5  ;;  %s231_s13 = scalar_lea.sflag (!%p1519_p8), [#allocation3], %s1561_s8 }
  0x26   : > { %s1565_s25 = scalar_lea.vmem (!%p1519_p8), [#allocation2], %s1115_s11 }
  0x27   : > { %1393 = dma.done.wait (%p1506_p4), %s231_s13, 512  }
  0x28   : > { %1395 = vsyncadd (%p1506_p4), %s231_s13, 4294966784 }
  0x29   : > { %1397 = dma.done.wait (%p60_p1), [#allocation6], 24576  }
  0x2a   : > { %1399 = vsyncadd (%p60_p1), [#allocation6], 4294942720  ;;  %v465_v0 = vld [vmem:[#allocation5 + $0x5b0] sm:$0xff]  ;;  %v466_v1 = vld [vmem:[#allocation5 + $0x5b8] sm:$0xff]  ;;  %s1636_s1 = sshll.u32 %s1561_s8, 7  ;;  %s1653_s23 = sshll.u32 %s1422_s18, 7 }
  0x2b   : > { %v453_v2 = vld [vmem:[#allocation5 + $0x550] sm:$0xff]  ;;  %533 = vmatpush.msra.mxu2 %v465_v0  ;;  %562 = vmatpush.msra.mxu3 %v466_v1  ;;  %v454_v3 = vld [vmem:[#allocation5 + $0x558] sm:$0xff]  ;;  %v463_v6 = vld [vmem:[#allocation5 + $0x5a0] sm:$0xff]  ;;  %s1639_s22 = scalar_lea.vmem [#allocation7], %s1636_s1  ;;  %s896_s9 = scalar_lea.hbm %s1794_s2, %s1653_s23 }
  0x2c   : > { %v441_v4 = vld [vmem:[#allocation5 + $0x4f0] sm:$0xff]  ;;  %v442_v5 = vld [vmem:[#allocation5 + $0x4f8] sm:$0xff]  ;;  %v464_v7 = vld [vmem:[#allocation5 + $0x5a8] sm:$0xff]  ;;  %475 = vmatpush.msra.mxu0 %v463_v6  ;;  %s897_s12 = sshll.u32 %s1639_s22, 4  ;;  %s1661_s26 = sshll.u32 %s896_s9, 4  ;;  %s898_s12 = int_to_ptr.vmem [resolvable:$true] %s897_s12  ;;  %s900_s26 = int_to_ptr.hbm [resolvable:$true] %s1661_s26 }
  0x2d   : > { %534 = vmatpush.msra.mxu2 %v453_v2  ;;  %563 = vmatpush.msra.mxu3 %v454_v3  ;;  %v451_v8 = vld [vmem:[#allocation5 + $0x540] sm:$0xff]  ;;  %v452_v9 = vld [vmem:[#allocation5 + $0x548] sm:$0xff]  ;;  %v429_v10 = vld [vmem:[#allocation5 + $0x490] sm:$0xff]  ;;  %s872_s18 = scalar_lea.sflag [#allocation4], %s1561_s8  ;;  %s1298_s27 = sshra.s32 %s900_s26, 4  ;;  %s1299_s27 = int_to_ptr.hbm [resolvable:$true] %s1298_s27 }
  0x2e   : > { %504 = vmatpush.msra.mxu1 %v464_v7  ;;  %v430_v11 = vld [vmem:[#allocation5 + $0x498] sm:$0xff]  ;;  %v439_v12 = vld [vmem:[#allocation5 + $0x4e0] sm:$0xff]  ;;  %v440_v13 = vld [vmem:[#allocation5 + $0x4e8] sm:$0xff]  ;;  %476 = vmatpush.msra.mxu0 %v451_v8  ;;  %s1300_s29 = scalar_lea.hbm %s1299_s27, 128  ;;  %s1304_s6 = scalar_lea.hbm %s1794_s2, 256 }
  0x2f   : > { %535 = vmatpush.msra.mxu2 %v441_v4  ;;  %564 = vmatpush.msra.mxu3 %v442_v5  ;;  %v417_v14 = vld [vmem:[#allocation5 + $0x430] sm:$0xff]  ;;  %v418_v15 = vld [vmem:[#allocation5 + $0x438] sm:$0xff]  ;;  %v427_v16 = vld [vmem:[#allocation5 + $0x480] sm:$0xff]  ;;  %p1301_p1 = scmp.ne.s32.totalorder %s1299_s27, %s1300_s29  ;;  %p1305_p10 = scmp.lt.s32.totalorder %s1299_s27, %s1794_s2 }
  0x30   : > { %505 = vmatpush.msra.mxu1 %v452_v9  ;;  %v428_v17 = vld [vmem:[#allocation5 + $0x488] sm:$0xff]  ;;  %477 = vmatpush.msra.mxu0 %v439_v12  ;;  %v405_v18 = vld [vmem:[#allocation5 + $0x3d0] sm:$0xff]  ;;  %v406_v19 = vld [vmem:[#allocation5 + $0x3d8] sm:$0xff]  ;;  %p1306_p12 = scmp.lt.s32.totalorder %s1304_s6, %s1300_s29 }
  0x31   : > { %536 = vmatpush.msra.mxu2 %v429_v10  ;;  %565 = vmatpush.msra.mxu3 %v430_v11  ;;  %v415_v20 = vld [vmem:[#allocation5 + $0x420] sm:$0xff]  ;;  %v416_v21 = vld [vmem:[#allocation5 + $0x428] sm:$0xff]  ;;  %v393_v22 = vld [vmem:[#allocation5 + $0x370] sm:$0xff]  ;;  %p1302_p4 = pnand %p1301_p1, %p1541_p5 }
  0x32   : > { %506 = vmatpush.msra.mxu1 %v440_v13  ;;  %478 = vmatpush.msra.mxu0 %v427_v16  ;;  %v394_v23 = vld [vmem:[#allocation5 + $0x378] sm:$0xff]  ;;  %v403_v24 = vld [vmem:[#allocation5 + $0x3c0] sm:$0xff]  ;;  %v404_v25 = vld [vmem:[#allocation5 + $0x3c8] sm:$0xff]  ;;  %p1307_p13 = por %p1306_p12, %p1305_p10 }
  0x33   : > { %537 = vmatpush.msra.mxu2 %v417_v14  ;;  %566 = vmatpush.msra.mxu3 %v418_v15  ;;  %v381_v26 = vld [vmem:[#allocation5 + $0x310] sm:$0xff]  ;;  %v382_v27 = vld [vmem:[#allocation5 + $0x318] sm:$0xff]  ;;  %v391_v28 = vld [vmem:[#allocation5 + $0x360] sm:$0xff]  ;;  %p1303_p8 = pneg %p1302_p4 }
  0x34   : > { %507 = vmatpush.msra.mxu1 %v428_v17  ;;  %479 = vmatpush.msra.mxu0 %v415_v20  ;;  %v392_v29 = vld [vmem:[#allocation5 + $0x368] sm:$0xff]  ;;  %v369_v30 = vld [vmem:[#allocation5 + $0x2b0] sm:$0xff]  ;;  %v370_v31 = vld [vmem:[#allocation5 + $0x2b8] sm:$0xff] }
  0x35   : > { %538 = vmatpush.msra.mxu2 %v405_v18  ;;  %567 = vmatpush.msra.mxu3 %v406_v19  ;;  %v379_v32 = vld [vmem:[#allocation5 + $0x300] sm:$0xff]  ;;  %v380_v33 = vld [vmem:[#allocation5 + $0x308] sm:$0xff]  ;;  %v357_v34 = vld [vmem:[#allocation5 + $0x250] sm:$0xff]  ;;  %p1308_p0 = pnand %p1307_p13, %p1303_p8 }
  0x36   : > { %508 = vmatpush.msra.mxu1 %v416_v21  ;;  %480 = vmatpush.msra.mxu0 %v403_v24  ;;  %v358_v35 = vld [vmem:[#allocation5 + $0x258] sm:$0xff]  ;;  %v367_v36 = vld [vmem:[#allocation5 + $0x2a0] sm:$0xff]  ;;  %v368_v37 = vld [vmem:[#allocation5 + $0x2a8] sm:$0xff] }
  0x37   : > { %539 = vmatpush.msra.mxu2 %v393_v22  ;;  %568 = vmatpush.msra.mxu3 %v394_v23  ;;  %v345_v38 = vld [vmem:[#allocation5 + $0x1f0] sm:$0xff]  ;;  %v346_v39 = vld [vmem:[#allocation5 + $0x1f8] sm:$0xff]  ;;  %v355_v40 = vld [vmem:[#allocation5 + $0x240] sm:$0xff] }
  0x38   : > { %509 = vmatpush.msra.mxu1 %v404_v25  ;;  %481 = vmatpush.msra.mxu0 %v391_v28  ;;  %v356_v41 = vld [vmem:[#allocation5 + $0x248] sm:$0xff]  ;;  %v333_v42 = vld [vmem:[#allocation5 + $0x190] sm:$0xff]  ;;  %v334_v43 = vld [vmem:[#allocation5 + $0x198] sm:$0xff] }
  0x39   : > { %540 = vmatpush.msra.mxu2 %v381_v26  ;;  %569 = vmatpush.msra.mxu3 %v382_v27  ;;  %v343_v44 = vld [vmem:[#allocation5 + $0x1e0] sm:$0xff]  ;;  %v344_v45 = vld [vmem:[#allocation5 + $0x1e8] sm:$0xff]  ;;  %v321_v46 = vld [vmem:[#allocation5 + $0x130] sm:$0xff] }
  0x3a   : > { %510 = vmatpush.msra.mxu1 %v392_v29  ;;  %482 = vmatpush.msra.mxu0 %v379_v32  ;;  %v322_v47 = vld [vmem:[#allocation5 + $0x138] sm:$0xff]  ;;  %v331_v48 = vld [vmem:[#allocation5 + $0x180] sm:$0xff]  ;;  %v332_v49 = vld [vmem:[#allocation5 + $0x188] sm:$0xff] }
  0x3b   : > { %541 = vmatpush.msra.mxu2 %v369_v30  ;;  %570 = vmatpush.msra.mxu3 %v370_v31  ;;  %v309_v50 = vld [vmem:[#allocation5 + $0xd0] sm:$0xff]  ;;  %v310_v51 = vld [vmem:[#allocation5 + $0xd8] sm:$0xff]  ;;  %v319_v52 = vld [vmem:[#allocation5 + $0x120] sm:$0xff] }
  0x3c   : > { %511 = vmatpush.msra.mxu1 %v380_v33  ;;  %483 = vmatpush.msra.mxu0 %v367_v36  ;;  %v320_v53 = vld [vmem:[#allocation5 + $0x128] sm:$0xff]  ;;  %v297_v54 = vld [vmem:[#allocation5 + $0x70] sm:$0xff]  ;;  %v298_v55 = vld [vmem:[#allocation5 + $0x78] sm:$0xff] }
  0x3d   : > { %542 = vmatpush.msra.mxu2 %v357_v34  ;;  %571 = vmatpush.msra.mxu3 %v358_v35  ;;  %v307_v56 = vld [vmem:[#allocation5 + $0xc0] sm:$0xff]  ;;  %v308_v57 = vld [vmem:[#allocation5 + $0xc8] sm:$0xff]  ;;  %v285_v58 = vld [vmem:[#allocation5 + $0x10] sm:$0xff] }
  0x3e   : > { %512 = vmatpush.msra.mxu1 %v368_v37  ;;  %484 = vmatpush.msra.mxu0 %v355_v40  ;;  %v286_v59 = vld [vmem:[#allocation5 + $0x18] sm:$0xff]  ;;  %v1576_v60 = vld [vmem:[%s1565_s25] sm:$0xff]  ;;  %v469_v61 = vld [vmem:[#allocation5 + $0x5d0] sm:$0xff] }
  0x3f   : > { %543 = vmatpush.msra.mxu2 %v345_v38  ;;  %572 = vmatpush.msra.mxu3 %v346_v39  ;;  %v470_v62 = vld [vmem:[#allocation5 + $0x5d8] sm:$0xff]  ;;  %v295_v63 = vld [vmem:[#allocation5 + $0x60] sm:$0xff]  ;;  %v296_v0 = vld [vmem:[#allocation5 + $0x68] sm:$0xff] }
  0x40   : > { %513 = vmatpush.msra.mxu1 %v356_v41  ;;  %485 = vmatpush.msra.mxu0 %v343_v44  ;;  %v457_v1 = vld [vmem:[#allocation5 + $0x570] sm:$0xff]  ;;  %v458_v2 = vld [vmem:[#allocation5 + $0x578] sm:$0xff]  ;;  %v283_v3 = vld [vmem:[#allocation5] sm:$0xff] }
  0x41   : > { %544 = vmatpush.msra.mxu2 %v333_v42  ;;  %573 = vmatpush.msra.mxu3 %v334_v43  ;;  %v284_v4 = vld [vmem:[#allocation5 + $0x8] sm:$0xff]  ;;  %v445_v5 = vld [vmem:[#allocation5 + $0x510] sm:$0xff]  ;;  %v446_v6 = vld [vmem:[#allocation5 + $0x518] sm:$0xff] }
  0x42   : > { %514 = vmatpush.msra.mxu1 %v344_v45  ;;  %486 = vmatpush.msra.mxu0 %v331_v48  ;;  %v467_v7 = vld [vmem:[#allocation5 + $0x5c0] sm:$0xff]  ;;  %v468_v8 = vld [vmem:[#allocation5 + $0x5c8] sm:$0xff]  ;;  %v433_v9 = vld [vmem:[#allocation5 + $0x4b0] sm:$0xff] }
  0x43   : > { %545 = vmatpush.msra.mxu2 %v321_v46  ;;  %574 = vmatpush.msra.mxu3 %v322_v47  ;;  %v434_v10 = vld [vmem:[#allocation5 + $0x4b8] sm:$0xff]  ;;  %v1583_v11 = vld [vmem:[%s1565_s25 + $0x8] sm:$0xff]  ;;  %v455_v12 = vld [vmem:[#allocation5 + $0x560] sm:$0xff] }
  0x44   : > { %515 = vmatpush.msra.mxu1 %v332_v49  ;;  %487 = vmatpush.msra.mxu0 %v319_v52  ;;  %v456_v13 = vld [vmem:[#allocation5 + $0x568] sm:$0xff]  ;;  %v421_v14 = vld [vmem:[#allocation5 + $0x450] sm:$0xff]  ;;  %v422_v15 = vld [vmem:[#allocation5 + $0x458] sm:$0xff] }
  0x45   : > { %546 = vmatpush.msra.mxu2 %v309_v50  ;;  %575 = vmatpush.msra.mxu3 %v310_v51  ;;  %v443_v16 = vld [vmem:[#allocation5 + $0x500] sm:$0xff]  ;;  %v444_v17 = vld [vmem:[#allocation5 + $0x508] sm:$0xff]  ;;  %v409_v18 = vld [vmem:[#allocation5 + $0x3f0] sm:$0xff] }
  0x46   : > { %516 = vmatpush.msra.mxu1 %v320_v53  ;;  %488 = vmatpush.msra.mxu0 %v307_v56  ;;  %v410_v19 = vld [vmem:[#allocation5 + $0x3f8] sm:$0xff]  ;;  %v431_v20 = vld [vmem:[#allocation5 + $0x4a0] sm:$0xff]  ;;  %v432_v21 = vld [vmem:[#allocation5 + $0x4a8] sm:$0xff] }
  0x47   : > { %547 = vmatpush.msra.mxu2 %v297_v54  ;;  %576 = vmatpush.msra.mxu3 %v298_v55  ;;  %v397_v22 = vld [vmem:[#allocation5 + $0x390] sm:$0xff]  ;;  %v398_v23 = vld [vmem:[#allocation5 + $0x398] sm:$0xff]  ;;  %v419_v24 = vld [vmem:[#allocation5 + $0x440] sm:$0xff] }
  0x48   : > { %517 = vmatpush.msra.mxu1 %v308_v57  ;;  %489 = vmatpush.msra.mxu0 %v295_v63  ;;  %v420_v25 = vld [vmem:[#allocation5 + $0x448] sm:$0xff]  ;;  %v385_v26 = vld [vmem:[#allocation5 + $0x330] sm:$0xff]  ;;  %v386_v27 = vld [vmem:[#allocation5 + $0x338] sm:$0xff] }
  0x49   : > { %548 = vmatpush.msra.mxu2 %v285_v58  ;;  %577 = vmatpush.msra.mxu3 %v286_v59  ;;  %v1590_v28 = vld [vmem:[%s1565_s25 + $0x10] sm:$0xff]  ;;  %v407_v29 = vld [vmem:[#allocation5 + $0x3e0] sm:$0xff]  ;;  %v408_v30 = vld [vmem:[#allocation5 + $0x3e8] sm:$0xff] }
  0x4a   : > { %549 = vmatmul.f32.vlgmr.msra.gmra.mxu2 %v1576_v60  ;;  %578 = vmatmul.f32.vlgmr.msra.gmra.mxu3 %v1576_v60  ;;  %v373_v31 = vld [vmem:[#allocation5 + $0x2d0] sm:$0xff]  ;;  %v374_v32 = vld [vmem:[#allocation5 + $0x2d8] sm:$0xff]  ;;  %v395_v33 = vld [vmem:[#allocation5 + $0x380] sm:$0xff] }
  0x4b   : > { %649 = vmatpush.msrb.mxu2 %v469_v61  ;;  %678 = vmatpush.msrb.mxu3 %v470_v62  ;;  %v396_v34 = vld [vmem:[#allocation5 + $0x388] sm:$0xff]  ;;  %v361_v35 = vld [vmem:[#allocation5 + $0x270] sm:$0xff]  ;;  %v362_v36 = vld [vmem:[#allocation5 + $0x278] sm:$0xff] }
  0x4c   : > { %518 = vmatpush.msra.mxu1 %v296_v0  ;;  %490 = vmatpush.msra.mxu0 %v283_v3  ;;  %v383_v37 = vld [vmem:[#allocation5 + $0x320] sm:$0xff]  ;;  %v384_v38 = vld [vmem:[#allocation5 + $0x328] sm:$0xff]  ;;  %v349_v39 = vld [vmem:[#allocation5 + $0x210] sm:$0xff] }
  0x4d   : > { %650 = vmatpush.msrb.mxu2 %v457_v1  ;;  %679 = vmatpush.msrb.mxu3 %v458_v2  ;;  %v350_v40 = vld [vmem:[#allocation5 + $0x218] sm:$0xff]  ;;  %v371_v41 = vld [vmem:[#allocation5 + $0x2c0] sm:$0xff]  ;;  %v372_v42 = vld [vmem:[#allocation5 + $0x2c8] sm:$0xff] }
  0x4e   : > { %519 = vmatpush.msra.mxu1 %v284_v4  ;;  %491 = vmatmul.f32.vlgmr.msra.gmra.mxu0 %v1576_v60  ;;  %v337_v43 = vld [vmem:[#allocation5 + $0x1b0] sm:$0xff]  ;;  %v338_v44 = vld [vmem:[#allocation5 + $0x1b8] sm:$0xff]  ;;  %v359_v46 = vld [vmem:[#allocation5 + $0x260] sm:$0xff] }
  0x4f   : > { %651 = vmatpush.msrb.mxu2 %v445_v5  ;;  %680 = vmatpush.msrb.mxu3 %v446_v6  ;;  %v1597_v45 = vld [vmem:[%s1565_s25 + $0x18] sm:$0xff]  ;;  %v360_v47 = vld [vmem:[#allocation5 + $0x268] sm:$0xff]  ;;  %v325_v48 = vld [vmem:[#allocation5 + $0x150] sm:$0xff] }
  0x50   : > { %520 = vmatmul.f32.vlgmr.msra.gmra.mxu1 %v1576_v60  ;;  %591 = vmatpush.msrb.mxu0 %v467_v7  ;;  %v326_v49 = vld [vmem:[#allocation5 + $0x158] sm:$0xff]  ;;  %v347_v50 = vld [vmem:[#allocation5 + $0x200] sm:$0xff]  ;;  %v348_v51 = vld [vmem:[#allocation5 + $0x208] sm:$0xff] }
  0x51   : > { %620 = vmatpush.msrb.mxu1 %v468_v8  ;;  %652 = vmatpush.msrb.mxu2 %v433_v9  ;;  %v313_v52 = vld [vmem:[#allocation5 + $0xf0] sm:$0xff]  ;;  %v314_v53 = vld [vmem:[#allocation5 + $0xf8] sm:$0xff]  ;;  %v335_v54 = vld [vmem:[#allocation5 + $0x1a0] sm:$0xff] }
  0x52   : > { %681 = vmatpush.msrb.mxu3 %v434_v10  ;;  %552 = vmatmul.f32.gmra.mxu2 %v1583_v11  ;;  %v336_v55 = vld [vmem:[#allocation5 + $0x1a8] sm:$0xff]  ;;  %v301_v56 = vld [vmem:[#allocation5 + $0x90] sm:$0xff]  ;;  %v302_v57 = vld [vmem:[#allocation5 + $0x98] sm:$0xff] }
  0x53   : > { %581 = vmatmul.f32.gmra.mxu3 %v1583_v11  ;;  %592 = vmatpush.msrb.mxu0 %v455_v12  ;;  %v323_v58 = vld [vmem:[#allocation5 + $0x140] sm:$0xff]  ;;  %v324_v59 = vld [vmem:[#allocation5 + $0x148] sm:$0xff]  ;;  %v289_v61 = vld [vmem:[#allocation5 + $0x30] sm:$0xff] }
  0x54   : > { %621 = vmatpush.msrb.mxu1 %v456_v13  ;;  %653 = vmatpush.msrb.mxu2 %v421_v14  ;;  %v290_v62 = vld [vmem:[#allocation5 + $0x38] sm:$0xff]  ;;  %v311_v63 = vld [vmem:[#allocation5 + $0xe0] sm:$0xff]  ;;  %v312_v0 = vld [vmem:[#allocation5 + $0xe8] sm:$0xff] }
  0x55   : > { %682 = vmatpush.msrb.mxu3 %v422_v15  ;;  %593 = vmatpush.msrb.mxu0 %v443_v16  ;;  %v473_v1 = vld [vmem:[#allocation5 + $0x5f0] sm:$0xff]  ;;  %v474_v2 = vld [vmem:[#allocation5 + $0x5f8] sm:$0xff]  ;;  %v299_v3 = vld [vmem:[#allocation5 + $0x80] sm:$0xff] }
  0x56   : > { %622 = vmatpush.msrb.mxu1 %v444_v17  ;;  %654 = vmatpush.msrb.mxu2 %v409_v18  ;;  %v300_v4 = vld [vmem:[#allocation5 + $0x88] sm:$0xff]  ;;  %v461_v5 = vld [vmem:[#allocation5 + $0x590] sm:$0xff]  ;;  %v462_v6 = vld [vmem:[#allocation5 + $0x598] sm:$0xff] }
  0x57   : > { %683 = vmatpush.msrb.mxu3 %v410_v19  ;;  %594 = vmatpush.msrb.mxu0 %v431_v20  ;;  %v287_v7 = vld [vmem:[#allocation5 + $0x20] sm:$0xff]  ;;  %v288_v8 = vld [vmem:[#allocation5 + $0x28] sm:$0xff]  ;;  %v449_v9 = vld [vmem:[#allocation5 + $0x530] sm:$0xff] }
  0x58   : > { %623 = vmatpush.msrb.mxu1 %v432_v21  ;;  %655 = vmatpush.msrb.mxu2 %v397_v22  ;;  %v450_v10 = vld [vmem:[#allocation5 + $0x538] sm:$0xff]  ;;  %v471_v12 = vld [vmem:[#allocation5 + $0x5e0] sm:$0xff]  ;;  %v472_v13 = vld [vmem:[#allocation5 + $0x5e8] sm:$0xff] }
  0x59   : > { %684 = vmatpush.msrb.mxu3 %v398_v23  ;;  %494 = vmatmul.f32.gmra.mxu0 %v1583_v11  ;;  %v437_v14 = vld [vmem:[#allocation5 + $0x4d0] sm:$0xff]  ;;  %v438_v15 = vld [vmem:[#allocation5 + $0x4d8] sm:$0xff]  ;;  %v459_v16 = vld [vmem:[#allocation5 + $0x580] sm:$0xff] }
  0x5a   : > { %523 = vmatmul.f32.gmra.mxu1 %v1583_v11  ;;  %595 = vmatpush.msrb.mxu0 %v419_v24  ;;  %v460_v17 = vld [vmem:[#allocation5 + $0x588] sm:$0xff]  ;;  %v425_v18 = vld [vmem:[#allocation5 + $0x470] sm:$0xff]  ;;  %v426_v19 = vld [vmem:[#allocation5 + $0x478] sm:$0xff] }
  0x5b   : > { %624 = vmatpush.msrb.mxu1 %v420_v25  ;;  %656 = vmatpush.msrb.mxu2 %v385_v26  ;;  %v447_v20 = vld [vmem:[#allocation5 + $0x520] sm:$0xff]  ;;  %v448_v21 = vld [vmem:[#allocation5 + $0x528] sm:$0xff]  ;;  %v413_v22 = vld [vmem:[#allocation5 + $0x410] sm:$0xff] }
  0x5c   : > { %685 = vmatpush.msrb.mxu3 %v386_v27  ;;  %555 = vmatmul.f32.gmra.mxu2 %v1590_v28  ;;  %v414_v23 = vld [vmem:[#allocation5 + $0x418] sm:$0xff]  ;;  %v435_v24 = vld [vmem:[#allocation5 + $0x4c0] sm:$0xff]  ;;  %v436_v25 = vld [vmem:[#allocation5 + $0x4c8] sm:$0xff] }
  0x5d   : > { %584 = vmatmul.f32.gmra.mxu3 %v1590_v28  ;;  %596 = vmatpush.msrb.mxu0 %v407_v29  ;;  %v401_v26 = vld [vmem:[#allocation5 + $0x3b0] sm:$0xff]  ;;  %v402_v27 = vld [vmem:[#allocation5 + $0x3b8] sm:$0xff]  ;;  %v423_v29 = vld [vmem:[#allocation5 + $0x460] sm:$0xff] }
  0x5e   : > { %625 = vmatpush.msrb.mxu1 %v408_v30  ;;  %657 = vmatpush.msrb.mxu2 %v373_v31  ;;  %v424_v30 = vld [vmem:[#allocation5 + $0x468] sm:$0xff]  ;;  %v389_v31 = vld [vmem:[#allocation5 + $0x350] sm:$0xff] }
  0x5f   : > { %686 = vmatpush.msrb.mxu3 %v374_v32  ;;  %597 = vmatpush.msrb.mxu0 %v395_v33  ;;  %v390_v32 = vld [vmem:[#allocation5 + $0x358] sm:$0xff]  ;;  %v411_v33 = vld [vmem:[#allocation5 + $0x400] sm:$0xff] }
  0x60   : > { %626 = vmatpush.msrb.mxu1 %v396_v34  ;;  %658 = vmatpush.msrb.mxu2 %v361_v35  ;;  %v412_v34 = vld [vmem:[#allocation5 + $0x408] sm:$0xff]  ;;  %v377_v35 = vld [vmem:[#allocation5 + $0x2f0] sm:$0xff] }
  0x61   : > { %687 = vmatpush.msrb.mxu3 %v362_v36  ;;  %598 = vmatpush.msrb.mxu0 %v383_v37  ;;  %v378_v36 = vld [vmem:[#allocation5 + $0x2f8] sm:$0xff]  ;;  %v399_v37 = vld [vmem:[#allocation5 + $0x3a0] sm:$0xff] }
  0x62   : > { %627 = vmatpush.msrb.mxu1 %v384_v38  ;;  %659 = vmatpush.msrb.mxu2 %v349_v39  ;;  %v400_v38 = vld [vmem:[#allocation5 + $0x3a8] sm:$0xff]  ;;  %v365_v39 = vld [vmem:[#allocation5 + $0x290] sm:$0xff] }
  0x63   : > { %688 = vmatpush.msrb.mxu3 %v350_v40  ;;  %497 = vmatmul.f32.gmra.mxu0 %v1590_v28  ;;  %v366_v40 = vld [vmem:[#allocation5 + $0x298] sm:$0xff] }
  0x64   : > { %526 = vmatmul.f32.gmra.mxu1 %v1590_v28  ;;  %599 = vmatpush.msrb.mxu0 %v371_v41  ;;  %v387_v41 = vld [vmem:[#allocation5 + $0x340] sm:$0xff] }
  0x65   : > { %628 = vmatpush.msrb.mxu1 %v372_v42  ;;  %660 = vmatpush.msrb.mxu2 %v337_v43  ;;  %v388_v42 = vld [vmem:[#allocation5 + $0x348] sm:$0xff]  ;;  %v353_v43 = vld [vmem:[#allocation5 + $0x230] sm:$0xff] }
  0x66   : > { %689 = vmatpush.msrb.mxu3 %v338_v44  ;;  %558 = vmatmul.f32.gmra.mxu2 %v1597_v45  ;;  %v354_v44 = vld [vmem:[#allocation5 + $0x238] sm:$0xff] }
  0x67   : > { %587 = vmatmul.f32.gmra.mxu3 %v1597_v45  ;;  %600 = vmatpush.msrb.mxu0 %v359_v46  ;;  %v375_v46 = vld [vmem:[#allocation5 + $0x2e0] sm:$0xff] }
  0x68   : > { %629 = vmatpush.msrb.mxu1 %v360_v47  ;;  %661 = vmatpush.msrb.mxu2 %v325_v48  ;;  %v376_v47 = vld [vmem:[#allocation5 + $0x2e8] sm:$0xff]  ;;  %v341_v48 = vld [vmem:[#allocation5 + $0x1d0] sm:$0xff] }
  0x69   : > { %690 = vmatpush.msrb.mxu3 %v326_v49  ;;  %601 = vmatpush.msrb.mxu0 %v347_v50  ;;  %v342_v49 = vld [vmem:[#allocation5 + $0x1d8] sm:$0xff]  ;;  %v363_v50 = vld [vmem:[#allocation5 + $0x280] sm:$0xff] }
  0x6a   : > { %630 = vmatpush.msrb.mxu1 %v348_v51  ;;  %662 = vmatpush.msrb.mxu2 %v313_v52  ;;  %v364_v51 = vld [vmem:[#allocation5 + $0x288] sm:$0xff]  ;;  %v329_v52 = vld [vmem:[#allocation5 + $0x170] sm:$0xff] }
  0x6b   : > { %691 = vmatpush.msrb.mxu3 %v314_v53  ;;  %602 = vmatpush.msrb.mxu0 %v335_v54  ;;  %v330_v53 = vld [vmem:[#allocation5 + $0x178] sm:$0xff]  ;;  %v351_v54 = vld [vmem:[#allocation5 + $0x220] sm:$0xff] }
  0x6c   : > { %631 = vmatpush.msrb.mxu1 %v336_v55  ;;  %663 = vmatpush.msrb.mxu2 %v301_v56  ;;  %v352_v55 = vld [vmem:[#allocation5 + $0x228] sm:$0xff]  ;;  %v317_v56 = vld [vmem:[#allocation5 + $0x110] sm:$0xff] }
  0x6d   : > { %692 = vmatpush.msrb.mxu3 %v302_v57  ;;  %500 = vmatmul.f32.gmra.mxu0 %v1597_v45  ;;  %v318_v57 = vld [vmem:[#allocation5 + $0x118] sm:$0xff] }
  0x6e   : > { %529 = vmatmul.f32.gmra.mxu1 %v1597_v45  ;;  %603 = vmatpush.msrb.mxu0 %v323_v58  ;;  %v339_v58 = vld [vmem:[#allocation5 + $0x1c0] sm:$0xff] }
  0x6f   : > { %632 = vmatpush.msrb.mxu1 %v324_v59  ;;  %664 = vmatpush.msrb.mxu2 %v289_v61  ;;  %v340_v59 = vld [vmem:[#allocation5 + $0x1c8] sm:$0xff]  ;;  %v305_v61 = vld [vmem:[#allocation5 + $0xb0] sm:$0xff] }
  0x70   : > { %693 = vmatpush.msrb.mxu3 %v290_v62  ;;  %604 = vmatpush.msrb.mxu0 %v311_v63  ;;  %v306_v62 = vld [vmem:[#allocation5 + $0xb8] sm:$0xff]  ;;  %v327_v63 = vld [vmem:[#allocation5 + $0x160] sm:$0xff] }
  0x71   : > { %633 = vmatpush.msrb.mxu1 %v312_v0  ;;  %665 = vmatmul.f32.vlgmr.msrb.gmra.mxu2 %v1576_v60  ;;  %v328_v0 = vld [vmem:[#allocation5 + $0x168] sm:$0xff] }
  0x72   : > { %694 = vmatmul.f32.vlgmr.msrb.gmra.mxu3 %v1576_v60  ;;  %765 = vmatpush.msra.mxu2 %v473_v1  ;;  %v293_v1 = vld [vmem:[#allocation5 + $0x50] sm:$0xff] }
  0x73   : > { %794 = vmatpush.msra.mxu3 %v474_v2  ;;  %605 = vmatpush.msrb.mxu0 %v299_v3  ;;  %v294_v2 = vld [vmem:[#allocation5 + $0x58] sm:$0xff]  ;;  %v315_v3 = vld [vmem:[#allocation5 + $0x100] sm:$0xff] }
  0x74   : > { %634 = vmatpush.msrb.mxu1 %v300_v4  ;;  %766 = vmatpush.msra.mxu2 %v461_v5  ;;  %v316_v4 = vld [vmem:[#allocation5 + $0x108] sm:$0xff]  ;;  %v303_v5 = vld [vmem:[#allocation5 + $0xa0] sm:$0xff] }
  0x75   : > { %795 = vmatpush.msra.mxu3 %v462_v6  ;;  %606 = vmatpush.msrb.mxu0 %v287_v7  ;;  %v304_v6 = vld [vmem:[#allocation5 + $0xa8] sm:$0xff]  ;;  %v291_v7 = vld [vmem:[#allocation5 + $0x40] sm:$0xff] }
  0x76   : > { %635 = vmatpush.msrb.mxu1 %v288_v8  ;;  %767 = vmatpush.msra.mxu2 %v449_v9  ;;  %v292_v8 = vld [vmem:[#allocation5 + $0x48] sm:$0xff] }
  0x77   : > { %796 = vmatpush.msra.mxu3 %v450_v10  ;;  %607 = vmatmul.f32.vlgmr.msrb.gmra.mxu0 %v1576_v60 }
  0x78   : > { %636 = vmatmul.f32.vlgmr.msrb.gmra.mxu1 %v1576_v60  ;;  %707 = vmatpush.msra.mxu0 %v471_v12 }
  0x79   : > { %736 = vmatpush.msra.mxu1 %v472_v13  ;;  %768 = vmatpush.msra.mxu2 %v437_v14 }
  0x7a   : > { %797 = vmatpush.msra.mxu3 %v438_v15  ;;  %668 = vmatmul.f32.gmra.mxu2 %v1583_v11 }
  0x7b   : > { %697 = vmatmul.f32.gmra.mxu3 %v1583_v11  ;;  %708 = vmatpush.msra.mxu0 %v459_v16 }
  0x7c   : > { %737 = vmatpush.msra.mxu1 %v460_v17  ;;  %769 = vmatpush.msra.mxu2 %v425_v18 }
  0x7d   : > { %798 = vmatpush.msra.mxu3 %v426_v19  ;;  %709 = vmatpush.msra.mxu0 %v447_v20 }
  0x7e   : > { %738 = vmatpush.msra.mxu1 %v448_v21  ;;  %770 = vmatpush.msra.mxu2 %v413_v22 }
  0x7f   : > { %799 = vmatpush.msra.mxu3 %v414_v23  ;;  %710 = vmatpush.msra.mxu0 %v435_v24 }
  0x80   : > { %739 = vmatpush.msra.mxu1 %v436_v25  ;;  %771 = vmatpush.msra.mxu2 %v401_v26 }
  0x81   : > { %800 = vmatpush.msra.mxu3 %v402_v27  ;;  %610 = vmatmul.f32.gmra.mxu0 %v1583_v11 }
  0x82   : > { %639 = vmatmul.f32.gmra.mxu1 %v1583_v11  ;;  %711 = vmatpush.msra.mxu0 %v423_v29 }
  0x83   : > { %740 = vmatpush.msra.mxu1 %v424_v30  ;;  %772 = vmatpush.msra.mxu2 %v389_v31 }
  0x84   : > { %801 = vmatpush.msra.mxu3 %v390_v32  ;;  %671 = vmatmul.f32.gmra.mxu2 %v1590_v28 }
  0x85   : > { %700 = vmatmul.f32.gmra.mxu3 %v1590_v28  ;;  %712 = vmatpush.msra.mxu0 %v411_v33 }
  0x86   : > { %741 = vmatpush.msra.mxu1 %v412_v34  ;;  %773 = vmatpush.msra.mxu2 %v377_v35 }
  0x87   : > { %802 = vmatpush.msra.mxu3 %v378_v36  ;;  %713 = vmatpush.msra.mxu0 %v399_v37 }
  0x88   : > { %742 = vmatpush.msra.mxu1 %v400_v38  ;;  %774 = vmatpush.msra.mxu2 %v365_v39 }
  0x89   : > { %803 = vmatpush.msra.mxu3 %v366_v40  ;;  %714 = vmatpush.msra.mxu0 %v387_v41 }
  0x8a   : > { %743 = vmatpush.msra.mxu1 %v388_v42  ;;  %775 = vmatpush.msra.mxu2 %v353_v43 }
  0x8b   : > { %804 = vmatpush.msra.mxu3 %v354_v44  ;;  %613 = vmatmul.f32.gmra.mxu0 %v1590_v28 }
  0x8c   : > { %642 = vmatmul.f32.gmra.mxu1 %v1590_v28  ;;  %715 = vmatpush.msra.mxu0 %v375_v46 }
  0x8d   : > { %744 = vmatpush.msra.mxu1 %v376_v47  ;;  %776 = vmatpush.msra.mxu2 %v341_v48 }
  0x8e   : > { %805 = vmatpush.msra.mxu3 %v342_v49  ;;  %674 = vmatmul.f32.gmra.mxu2 %v1597_v45 }
  0x8f   : > { %703 = vmatmul.f32.gmra.mxu3 %v1597_v45  ;;  %716 = vmatpush.msra.mxu0 %v363_v50 }
  0x90   : > { %745 = vmatpush.msra.mxu1 %v364_v51  ;;  %777 = vmatpush.msra.mxu2 %v329_v52 }
  0x91   : > { %806 = vmatpush.msra.mxu3 %v330_v53  ;;  %717 = vmatpush.msra.mxu0 %v351_v54 }
  0x92   : > { %746 = vmatpush.msra.mxu1 %v352_v55  ;;  %778 = vmatpush.msra.mxu2 %v317_v56 }
  0x93   : > { %807 = vmatpush.msra.mxu3 %v318_v57  ;;  %718 = vmatpush.msra.mxu0 %v339_v58 }
  0x94   : > { %747 = vmatpush.msra.mxu1 %v340_v59  ;;  %779 = vmatpush.msra.mxu2 %v305_v61 }
  0x95   : > { %808 = vmatpush.msra.mxu3 %v306_v62  ;;  %616 = vmatmul.f32.gmra.mxu0 %v1597_v45 }
  0x96   : > { %645 = vmatmul.f32.gmra.mxu1 %v1597_v45  ;;  %719 = vmatpush.msra.mxu0 %v327_v63 }
  0x97   : > { %748 = vmatpush.msra.mxu1 %v328_v0  ;;  %780 = vmatpush.msra.mxu2 %v293_v1 }
  0x98   : > { %809 = vmatpush.msra.mxu3 %v294_v2  ;;  %720 = vmatpush.msra.mxu0 %v315_v3 }
  0x99   : > { %749 = vmatpush.msra.mxu1 %v316_v4  ;;  %781 = vmatmul.f32.vlgmr.msra.gmra.mxu2 %v1576_v60 }
  0x9a   : > { %810 = vmatmul.f32.vlgmr.msra.gmra.mxu3 %v1576_v60  ;;  %721 = vmatpush.msra.mxu0 %v303_v5 }
  0x9b   : > { %750 = vmatpush.msra.mxu1 %v304_v6 }
  0x9c   : > { %722 = vmatpush.msra.mxu0 %v291_v7 }
  0x9d   : > { %751 = vmatpush.msra.mxu1 %v292_v8  ;;  %723 = vmatmul.f32.vlgmr.msra.gmra.mxu0 %v1576_v60 }
  0x9e   : > { %752 = vmatmul.f32.vlgmr.msra.gmra.mxu1 %v1576_v60 }
  0xa1   : > { %784 = vmatmul.f32.gmra.mxu2 %v1583_v11 }
  0xa2   : > { %813 = vmatmul.f32.gmra.mxu3 %v1583_v11 }
  0xa5   : > { %726 = vmatmul.f32.gmra.mxu0 %v1583_v11 }
  0xa6   : > { %755 = vmatmul.f32.gmra.mxu1 %v1583_v11 }
  0xa9   : > { %787 = vmatmul.f32.gmra.mxu2 %v1590_v28 }
  0xaa   : > { %816 = vmatmul.f32.gmra.mxu3 %v1590_v28 }
  0xad   : > { %729 = vmatmul.f32.gmra.mxu0 %v1590_v28 }
  0xae   : > { %758 = vmatmul.f32.gmra.mxu1 %v1590_v28 }
  0xb1   : > { %790 = vmatmul.f32.gmra.mxu2 %v1597_v45 }
  0xb2   : > { %819 = vmatmul.f32.gmra.mxu3 %v1597_v45 }
  0xb5   : > { %732 = vmatmul.f32.gmra.mxu0 %v1597_v45 }
  0xb6   : > { %761 = vmatmul.f32.gmra.mxu1 %v1597_v45 }
  0xcb   : > { %v492_v60 = vpop.f32.mrf.mxu0 }
  0xcc   : > { %823 = vst [vmem:[%s1639_s22] sm:$0xff] %v492_v60 }
  0xcd   : > { %v521_v11 = vpop.f32.mrf.mxu1  ;;  %v550_v28 = vpop.f32.mrf.mxu2 }
  0xce   : > { %v579_v9 = vpop.f32.mrf.mxu3  ;;  %824 = vst [vmem:[%s1639_s22 + $0x8] sm:$0xff] %v521_v11 }
  0xcf   : > { %825 = vst [vmem:[%s1639_s22 + $0x10] sm:$0xff] %v550_v28 }
  0xd0   : > { %826 = vst [vmem:[%s1639_s22 + $0x18] sm:$0xff] %v579_v9 }
  0xd5   : > { %v553_v45 = vpop.f32.mrf.mxu2 }
  0xd6   : > { %v582_v10 = vpop.f32.mrf.mxu3  ;;  %v495_v12 = vpop.f32.mrf.mxu0  ;;  %829 = vst [vmem:[%s1639_s22 + $0x30] sm:$0xff] %v553_v45 }
  0xd7   : > { %v524_v13 = vpop.f32.mrf.mxu1  ;;  %827 = vst [vmem:[%s1639_s22 + $0x20] sm:$0xff] %v495_v12 }
  0xd8   : > { %828 = vst [vmem:[%s1639_s22 + $0x28] sm:$0xff] %v524_v13 }
  0xd9   : > { %830 = vst [vmem:[%s1639_s22 + $0x38] sm:$0xff] %v582_v10 }
  0xdf   : > { %v556_v14 = vpop.f32.mrf.mxu2 }
  0xe0   : > { %v585_v15 = vpop.f32.mrf.mxu3  ;;  %v498_v16 = vpop.f32.mrf.mxu0  ;;  %833 = vst [vmem:[%s1639_s22 + $0x50] sm:$0xff] %v556_v14 }
  0xe1   : > { %v527_v17 = vpop.f32.mrf.mxu1  ;;  %831 = vst [vmem:[%s1639_s22 + $0x40] sm:$0xff] %v498_v16 }
  0xe2   : > { %832 = vst [vmem:[%s1639_s22 + $0x48] sm:$0xff] %v527_v17 }
  0xe3   : > { %834 = vst [vmem:[%s1639_s22 + $0x58] sm:$0xff] %v585_v15 }
  0xe9   : > { %v559_v18 = vpop.f32.mrf.mxu2 }
  0xea   : > { %v588_v19 = vpop.f32.mrf.mxu3  ;;  %v501_v20 = vpop.f32.mrf.mxu0  ;;  %837 = vst [vmem:[%s1639_s22 + $0x70] sm:$0xff] %v559_v18 }
  0xeb   : > { %v530_v21 = vpop.f32.mrf.mxu1  ;;  %835 = vst [vmem:[%s1639_s22 + $0x60] sm:$0xff] %v501_v20 }
  0xec   : > { %836 = vst [vmem:[%s1639_s22 + $0x68] sm:$0xff] %v530_v21 }
  0xed   : > { %838 = vst [vmem:[%s1639_s22 + $0x78] sm:$0xff] %v588_v19 }
  0xee   : > { %1311 = shalt.err (!%p1308_p0)
}
  0xef   : > { %s1437_s8 = smov 512   ;;  %s1438_s25 = smov 32  }
  0xf0   : > { %1141 = dma.vmem_to_hbm [thread:$0]  (%p1541_p5), %s898_s12, 2048, %s900_s26, %s872_s18, %s1437_s8, %s1437_s8, %s1438_s25  }
  0xf1   : > { %s1683_s22 = scalar_lea.vmem [#allocation8], %s1636_s1  ;;  %s916_s9 = scalar_lea.hbm %s1795_s3, %s1653_s23 }
  0xf2   : > { %s876_s12 = sand.u32 1, %s1495_s21   ;;  %s917_s26 = sshll.u32 %s1683_s22, 4  ;;  %s918_s26 = int_to_ptr.vmem [resolvable:$true] %s917_s26 }
  0xf3   : > { %s1703_s18 = sshll.u32 %s916_s9, 4  ;;  %s1710_s27 = scalar_lea.sflag [#allocation9], %s876_s12  ;;  %s920_s18 = int_to_ptr.hbm [resolvable:$true] %s1703_s18 }
  0xf4   : > { %v608_v22 = vpop.f32.mrf.mxu0  ;;  %v666_v24 = vpop.f32.mrf.mxu2  ;;  %s1326_s29 = sshra.s32 %s920_s18, 4  ;;  %s1332_s6 = scalar_lea.hbm %s1795_s3, 256  ;;  %s1327_s29 = int_to_ptr.hbm [resolvable:$true] %s1326_s29 }
  0xf5   : > { %v637_v23 = vpop.f32.mrf.mxu1  ;;  %839 = vst [vmem:[%s1683_s22] sm:$0xff] %v608_v22  ;;  %v695_v25 = vpop.f32.mrf.mxu3  ;;  %s1328_s21 = scalar_lea.hbm %s1327_s29, 128  ;;  %p1333_p2 = scmp.lt.s32.totalorder %s1327_s29, %s1795_s3 }
  0xf6   : > { %840 = vst [vmem:[%s1683_s22 + $0x8] sm:$0xff] %v637_v23  ;;  %p1329_p3 = scmp.ne.s32.totalorder %s1327_s29, %s1328_s21  ;;  %p1334_p1 = scmp.lt.s32.totalorder %s1332_s6, %s1328_s21 }
  0xf7   : > { %841 = vst [vmem:[%s1683_s22 + $0x10] sm:$0xff] %v666_v24 }
  0xf8   : > { %842 = vst [vmem:[%s1683_s22 + $0x18] sm:$0xff] %v695_v25  ;;  %p1330_p7 = pnand %p1329_p3, %p1541_p5  ;;  %p1335_p4 = por %p1334_p1, %p1333_p2 }
  0xfa   : > { %p1331_p9 = pneg %p1330_p7 }
  0xfc   : > { %p1336_p8 = pnand %p1335_p4, %p1331_p9 }
  0xfd   : > { %v669_v26 = vpop.f32.mrf.mxu2 }
  0xfe   : > { %v698_v27 = vpop.f32.mrf.mxu3  ;;  %v611_v29 = vpop.f32.mrf.mxu0  ;;  %845 = vst [vmem:[%s1683_s22 + $0x30] sm:$0xff] %v669_v26 }
  0xff   : > { %v640_v30 = vpop.f32.mrf.mxu1  ;;  %843 = vst [vmem:[%s1683_s22 + $0x20] sm:$0xff] %v611_v29 }
 0x100   : > { %844 = vst [vmem:[%s1683_s22 + $0x28] sm:$0xff] %v640_v30 }
 0x101   : > { %846 = vst [vmem:[%s1683_s22 + $0x38] sm:$0xff] %v698_v27 }
 0x107   : > { %v672_v31 = vpop.f32.mrf.mxu2 }
 0x108   : > { %v701_v32 = vpop.f32.mrf.mxu3  ;;  %v614_v33 = vpop.f32.mrf.mxu0  ;;  %849 = vst [vmem:[%s1683_s22 + $0x50] sm:$0xff] %v672_v31 }
 0x109   : > { %v643_v34 = vpop.f32.mrf.mxu1  ;;  %847 = vst [vmem:[%s1683_s22 + $0x40] sm:$0xff] %v614_v33 }
 0x10a   : > { %848 = vst [vmem:[%s1683_s22 + $0x48] sm:$0xff] %v643_v34 }
 0x10b   : > { %850 = vst [vmem:[%s1683_s22 + $0x58] sm:$0xff] %v701_v32 }
 0x111   : > { %v675_v35 = vpop.f32.mrf.mxu2 }
 0x112   : > { %v704_v36 = vpop.f32.mrf.mxu3  ;;  %v617_v37 = vpop.f32.mrf.mxu0  ;;  %853 = vst [vmem:[%s1683_s22 + $0x70] sm:$0xff] %v675_v35 }
 0x113   : > { %v646_v38 = vpop.f32.mrf.mxu1  ;;  %851 = vst [vmem:[%s1683_s22 + $0x60] sm:$0xff] %v617_v37 }
 0x114   : > { %852 = vst [vmem:[%s1683_s22 + $0x68] sm:$0xff] %v646_v38 }
 0x115   : > { %854 = vst [vmem:[%s1683_s22 + $0x78] sm:$0xff] %v704_v36 }
 0x116   : > { %1339 = shalt.err (!%p1336_p8)
}
 0x117   : > { %1142 = dma.vmem_to_hbm [thread:$0]  (%p1541_p5), %s918_s26, 2048, %s920_s18, %s1710_s27, %s1437_s8, %s1437_s8, %s1438_s25  }
 0x118   : > { %s1727_s22 = scalar_lea.vmem [#allocation10], %s1636_s1  ;;  %s936_s7 = scalar_lea.hbm %s1796_s4, %s1653_s23 }
 0x119   : > { %s1745_s9 = sshll.u32 %s936_s7, 4  ;;  %s937_s12 = sshll.u32 %s1727_s22, 4  ;;  %s940_s9 = int_to_ptr.hbm [resolvable:$true] %s1745_s9  ;;  %s938_s12 = int_to_ptr.vmem [resolvable:$true] %s937_s12 }
 0x11a   : > { %v724_v39 = vpop.f32.mrf.mxu0  ;;  %s1354_s26 = sshra.s32 %s940_s9, 4  ;;  %s1360_s21 = scalar_lea.hbm %s1796_s4, 256  ;;  %s1355_s26 = int_to_ptr.hbm [resolvable:$true] %s1354_s26 }
 0x11b   : > { %v753_v40 = vpop.f32.mrf.mxu1  ;;  %855 = vst [vmem:[%s1727_s22] sm:$0xff] %v724_v39  ;;  %s1356_s18 = scalar_lea.hbm %s1355_s26, 128  ;;  %p1361_p0 = scmp.lt.s32.totalorder %s1355_s26, %s1796_s4 }
 0x11c   : > { %856 = vst [vmem:[%s1727_s22 + $0x8] sm:$0xff] %v753_v40  ;;  %v782_v41 = vpop.f32.mrf.mxu2  ;;  %p1357_p10 = scmp.ne.s32.totalorder %s1355_s26, %s1356_s18  ;;  %p1362_p3 = scmp.lt.s32.totalorder %s1360_s21, %s1356_s18 }
 0x11d   : > { %v811_v42 = vpop.f32.mrf.mxu3  ;;  %857 = vst [vmem:[%s1727_s22 + $0x10] sm:$0xff] %v782_v41 }
 0x11e   : > { %858 = vst [vmem:[%s1727_s22 + $0x18] sm:$0xff] %v811_v42  ;;  %p1358_p12 = pnand %p1357_p10, %p1541_p5  ;;  %p1363_p7 = por %p1362_p3, %p1361_p0 }
 0x120   : > { %p1359_p13 = pneg %p1358_p12 }
 0x122   : > { %v727_v43 = vpop.f32.mrf.mxu0  ;;  %p1364_p9 = pnand %p1363_p7, %p1359_p13 }
 0x123   : > { %v756_v44 = vpop.f32.mrf.mxu1  ;;  %859 = vst [vmem:[%s1727_s22 + $0x20] sm:$0xff] %v727_v43 }
 0x124   : > { %860 = vst [vmem:[%s1727_s22 + $0x28] sm:$0xff] %v756_v44  ;;  %v785_v46 = vpop.f32.mrf.mxu2 }
 0x125   : > { %v814_v47 = vpop.f32.mrf.mxu3  ;;  %861 = vst [vmem:[%s1727_s22 + $0x30] sm:$0xff] %v785_v46 }
 0x126   : > { %862 = vst [vmem:[%s1727_s22 + $0x38] sm:$0xff] %v814_v47 }
 0x12a   : > { %v730_v48 = vpop.f32.mrf.mxu0 }
 0x12b   : > { %v759_v49 = vpop.f32.mrf.mxu1  ;;  %863 = vst [vmem:[%s1727_s22 + $0x40] sm:$0xff] %v730_v48 }
 0x12c   : > { %864 = vst [vmem:[%s1727_s22 + $0x48] sm:$0xff] %v759_v49  ;;  %v788_v50 = vpop.f32.mrf.mxu2 }
 0x12d   : > { %v817_v51 = vpop.f32.mrf.mxu3  ;;  %865 = vst [vmem:[%s1727_s22 + $0x50] sm:$0xff] %v788_v50 }
 0x12e   : > { %866 = vst [vmem:[%s1727_s22 + $0x58] sm:$0xff] %v817_v51 }
 0x132   : > { %v733_v52 = vpop.f32.mrf.mxu0 }
 0x133   : > { %v762_v53 = vpop.f32.mrf.mxu1  ;;  %867 = vst [vmem:[%s1727_s22 + $0x60] sm:$0xff] %v733_v52 }
 0x134   : > { %868 = vst [vmem:[%s1727_s22 + $0x68] sm:$0xff] %v762_v53  ;;  %v791_v54 = vpop.f32.mrf.mxu2 }
 0x135   : > { %v820_v55 = vpop.f32.mrf.mxu3  ;;  %869 = vst [vmem:[%s1727_s22 + $0x70] sm:$0xff] %v791_v54 }
 0x136   : > { %870 = vst [vmem:[%s1727_s22 + $0x78] sm:$0xff] %v820_v55 }
 0x137   : > { %1367 = shalt.err (!%p1364_p9)
}
 0x138   : > { %1143 = dma.vmem_to_hbm [thread:$0]  (%p1541_p5), %s938_s12, 2048, %s940_s9, %s1710_s27, %s1437_s8, %s1437_s8, %s1438_s25  }
 0x139 PF: > { %s954_s6 = sand.u32 1, %s1410_s15   ;;  %p1156_p2 = pnand %p1110_p11, %p1511_p6 }
 0x13a   : > { %s955_s11 = scalar_lea.sflag [#allocation4], %s954_s6 }
 0x13b   : > { %p1157_p1 = pneg %p1156_p2 }
 0x13d   : > { %1401 = dma.done.wait (%p1157_p1), %s955_s11, 2048  }
 0x13e   : > { %1403 = vsyncadd (%p1157_p1), %s955_s11, 4294965248  ;;  %s1807_s13 = sadd.s32 4294967294, %s1430_s20  }
 0x13f   : > { %s964_s10 = sand.u32 1, %s1807_s13  }
 0x140   : > { %s965_s22 = scalar_lea.sflag [#allocation9], %s964_s10 }
 0x141   : > { %1405 = dma.done.wait (%p1157_p1), %s965_s22, 4096  }
 0x142   : > { %1407 = vsyncadd (%p1157_p1), %s965_s22, 4294963200  ;;  %s25_s20 = sadd.s32 1, %s1430_s20   ;;  %s1808_s24 = sld [smem:[#allocation15_spill]] }
 0x143   : > { %p22_p5 = scmp.ge.s32.totalorder %s25_s20, 4   ;;  %s1809_s15 = smov %s1414_s16 }
 0x144   : > { %s1810_s16 = smov %s1418_s17  ;;  %s1811_s17 = smov %s1550_s14 }
 0x145   : > { %s1812_s18 = smov %s1426_s19  ;;  %24 = sbr.rel (!%p22_p5) target bundleno = 11 (0xb), region = 109 }
 0x148   : > { %s1813_s19 = smov %s1808_s24 }
 0x14a   :  { %981 = vsyncpa [#allocation3], 1 }
 0x14b   :  { %983 = vsyncpa [#allocation3 + $0x1], 1 }
 0x14c   :  { %984 = vsyncpa [#allocation6], 1 }
 0x14d   :  { %985 = vsyncpa [#allocation4], 1 }
 0x14e   :  { %987 = vsyncpa [#allocation4 + $0x1], 1 }
 0x14f   :  { %988 = vsyncpa [#allocation9], 1 }
 0x150   :  { %990 = vsyncpa [#allocation9 + $0x1], 1 }

</bundles_post_ra>
